<compile_context>
chip_gen: v5e
topology: v5e:2x2
jax: 0.10.0
libtpu: 0.0.40
codegen_flags: <defaults>
</compile_context>

<pallas_src>
import functools

import jax
import jax.numpy as jnp
from jax.experimental import pallas as pl
from jax.experimental.pallas import tpu as pltpu


# ----------------------------------------------------------------------------
# Small helpers (padding / tile selection / VMEM budgeting)
# ----------------------------------------------------------------------------
_RESIDENT_BYTES = 8 * 2**20          # per-operand budget to keep a matrix VMEM-resident


def _round_up(x, m):
    return (x + m - 1) // m * m


def _pick_div(padded, target):
    """Largest multiple of 128 <= target that divides `padded` (padded % 128 == 0)."""
    t = min(target, padded)
    while padded % t:
        t -= 128
    return t


def _pick_row_tile(rows_pad, target):
    """Row tile; keeps >=2 row blocks when possible (v7x has 2 TensorCores)."""
    cap = rows_pad
    if rows_pad >= 256:
        cap = max(128, (rows_pad // 2) // 128 * 128)
    return _pick_div(rows_pad, min(target, cap))


def _pad2(x, rows, cols):
    return jnp.pad(x, ((0, rows - x.shape[0]), (0, cols - x.shape[1])))


def _pad_bias(b, c_pad):
    return jnp.pad(b, (0, c_pad - b.shape[0])).reshape(1, -1).astype(jnp.float32)


def _vmem_limit(est_bytes):
    # explicit scoped-VMEM limit: estimate + headroom, capped below v7x physical
    return int(min(48 * 2**20, max(32 * 2**20, est_bytes + (8 << 20))))


# ----------------------------------------------------------------------------
# Pallas kernels
# ----------------------------------------------------------------------------
def _proj_kernel(tk, resident_w, x_ref, w_ref, o_ref, acc_ref):
    """Tiled o = x @ w with f32 accumulation over the K grid axis.

    If `resident_w`, w_ref holds the whole (f_pad, cout_pad) weight (fetched
    once) and is sliced by the K index inside the kernel.
    """
    k = pl.program_id(1)

    @pl.when(k == 0)
    def _():
        acc_ref[...] = jnp.zeros_like(acc_ref)

    if resident_w:
        start = pl.multiple_of(k * tk, tk)
        w_blk = w_ref[pl.ds(start, tk), :]
    else:
        w_blk = w_ref[...]

    acc_ref[...] += jnp.dot(x_ref[...], w_blk, preferred_element_type=jnp.float32)

    @pl.when(k == pl.num_programs(1) - 1)
    def _():
        o_ref[...] = acc_ref[...].astype(o_ref.dtype)


def _sage_agg_kernel(relu, tk, resident_h, a_ref, h_ref, self_ref, b_ref,
                     o_ref, acc_ref):
    """out = A_norm @ h_src  (+ precomputed self-term + bias [+ relu] on last K)."""
    k = pl.program_id(1)

    @pl.when(k == 0)
    def _():
        acc_ref[...] = jnp.zeros_like(acc_ref)

    if resident_h:
        start = pl.multiple_of(k * tk, tk)
        h_blk = h_ref[pl.ds(start, tk), :]
    else:
        h_blk = h_ref[...]

    acc_ref[...] += jnp.dot(a_ref[...], h_blk, preferred_element_type=jnp.float32)

    @pl.when(k == pl.num_programs(1) - 1)
    def _():
        out = acc_ref[...] + self_ref[...].astype(jnp.float32) + b_ref[...]
        if relu:
            out = jnp.maximum(out, 0.0)
        o_ref[...] = out.astype(o_ref.dtype)


def _decoder_kernel(te8, z_ref, w1_ref, b1_ref, w2_ref, b2_ref, o_ref):
    """EdgeDecoder MLP: lin1 + relu + lin2 (width-1 head on the VPU/XLU)."""
    h = (jnp.dot(z_ref[...], w1_ref[...], preferred_element_type=jnp.float32)
         + b1_ref[...])
    h = jnp.maximum(h, 0.0)
    # TODO(synk): dropout(p=0.5) is elided (eval-mode identity); torch RNG
    # cannot be reproduced bit-exactly here anyway.
    h3 = h.reshape(8, te8, h.shape[-1])                 # leading-dim split only
    score = jnp.sum(h3 * w2_ref[...][None, :, :], axis=-1)   # (8, te8)
    o_ref[...] = score + b2_ref[0]                      # sublane/lane-dense store


# ----------------------------------------------------------------------------
# Pallas wrappers
# ----------------------------------------------------------------------------
def project(x_pad, w_pad, *, tm_target=1024, tk_target=2048):
    """h = x_pad @ w_pad (both already padded bf16); returns padded bf16."""
    rows_pad, f_pad = x_pad.shape
    cout_pad = w_pad.shape[1]
    tm = _pick_row_tile(rows_pad, tm_target)
    tk = _pick_div(f_pad, tk_target)

    resident_w = f_pad * cout_pad * 2 <= _RESIDENT_BYTES
    if resident_w:
        w_spec = pl.BlockSpec((f_pad, cout_pad), lambda i, k: (0, 0))
        w_rows = f_pad
    else:
        w_spec = pl.BlockSpec((tk, cout_pad), lambda i, k: (k, 0))
        w_rows = tk

    est = (2 * tm * tk * 2 + 2 * w_rows * cout_pad * 2
           + 2 * tm * cout_pad * 2 + tm * cout_pad * 4)

    return pl.pallas_call(
        functools.partial(_proj_kernel, tk, resident_w),
        out_shape=jax.ShapeDtypeStruct((rows_pad, cout_pad), jnp.bfloat16),
        grid_spec=pltpu.PrefetchScalarGridSpec(
            num_scalar_prefetch=0,
            grid=(rows_pad // tm, f_pad // tk),
            in_specs=[pl.BlockSpec((tm, tk), lambda i, k: (i, k)), w_spec],
            out_specs=pl.BlockSpec((tm, cout_pad), lambda i, k: (i, 0)),
            scratch_shapes=[pltpu.VMEM((tm, cout_pad), jnp.float32)]),
        compiler_params=pltpu.CompilerParams(
            dimension_semantics=("parallel", "arbitrary"),
            vmem_limit_bytes=_vmem_limit(est)),
    )(x_pad, w_pad)


def sage_agg(a_pad, h_src_both, self_both, b_pad, *, c_pad, relu,
             tm_target=1024, tk_target=2048):
    """out = A_norm @ h_src + self_term + b [+ relu], all operands pre-padded.

    h_src_both / self_both are (n_pad, 2*c_pad) fused projections; column
    block 0 is the W_l half (neighbor message), block 1 is the W_r half (self).
    """
    n_dst_pad, n_src_pad = a_pad.shape
    tm = _pick_row_tile(n_dst_pad, tm_target)
    tk = _pick_div(n_src_pad, tk_target)

    resident_h = n_src_pad * c_pad * 2 <= _RESIDENT_BYTES
    if resident_h:
        h_spec = pl.BlockSpec((n_src_pad, c_pad), lambda i, k: (0, 0))
        h_rows = n_src_pad
    else:
        h_spec = pl.BlockSpec((tk, c_pad), lambda i, k: (k, 0))
        h_rows = tk

    est = (2 * tm * tk * 2 + 2 * h_rows * c_pad * 2 + 2 * tm * c_pad * 2
           + 2 * tm * c_pad * 2 + tm * c_pad * 4 + 2 * c_pad * 4)

    return pl.pallas_call(
        functools.partial(_sage_agg_kernel, relu, tk, resident_h),
        out_shape=jax.ShapeDtypeStruct((n_dst_pad, c_pad), jnp.bfloat16),
        grid_spec=pltpu.PrefetchScalarGridSpec(
            num_scalar_prefetch=0,
            grid=(n_dst_pad // tm, n_src_pad // tk),
            in_specs=[pl.BlockSpec((tm, tk), lambda i, k: (i, k)),       # A
                      h_spec,                                            # h_src (col blk 0)
                      pl.BlockSpec((tm, c_pad), lambda i, k: (i, 1)),    # self  (col blk 1)
                      pl.BlockSpec((1, c_pad), lambda i, k: (0, 0))],    # bias
            out_specs=pl.BlockSpec((tm, c_pad), lambda i, k: (i, 0)),
            scratch_shapes=[pltpu.VMEM((tm, c_pad), jnp.float32)]),
        compiler_params=pltpu.CompilerParams(
            dimension_semantics=("parallel", "arbitrary"),
            vmem_limit_bytes=_vmem_limit(est)),
    )(a_pad, h_src_both, self_both, b_pad)


def edge_decoder(z_pad, w1_p, b1_p, w2_p, b2_p, *, te_target=2048):
    """EdgeDecoder MLP over padded z; returns flat padded scores (f32)."""
    e_pad, d_pad = z_pad.shape
    h1_pad = w1_p.shape[1]
    te = _pick_row_tile(e_pad, te_target)
    te8 = te // 8
    nb = e_pad // te

    est = (2 * te * d_pad * 2 + 2 * d_pad * h1_pad * 2 + 4 * h1_pad * 4
           + 2 * 8 * te8 * 4 + te * h1_pad * 4)

    out = pl.pallas_call(
        functools.partial(_decoder_kernel, te8),
        out_shape=jax.ShapeDtypeStruct((nb * 8, te8), jnp.float32),
        grid_spec=pltpu.PrefetchScalarGridSpec(
            num_scalar_prefetch=0,
            grid=(nb,),
            in_specs=[pl.BlockSpec((te, d_pad), lambda i: (i, 0)),
                      pl.BlockSpec((d_pad, h1_pad), lambda i: (0, 0)),
                      pl.BlockSpec((1, h1_pad), lambda i: (0, 0)),
                      pl.BlockSpec((1, h1_pad), lambda i: (0, 0)),
                      pl.BlockSpec(memory_space=pltpu.MemorySpace.SMEM)],
            out_specs=pl.BlockSpec((8, te8), lambda i: (i, 0))),
        compiler_params=pltpu.CompilerParams(
            dimension_semantics=("parallel",),
            vmem_limit_bytes=_vmem_limit(est)),
    )(z_pad, w1_p, b1_p, w2_p, b2_p)
    return out.reshape(-1)


# ----------------------------------------------------------------------------
# Glue (plain JAX): adjacency construction, gathers, parameter setup
# ----------------------------------------------------------------------------
def mean_adjacency(edge_index, n_src, n_dst, n_src_pad, n_dst_pad):
    """Row-normalized dense adjacency A[d, s] = 1/deg(d), padded, bf16."""
    # TODO(synk): replace the dense O(N^2) adjacency with a sparse segment-sum
    # aggregation kernel (scalar-prefetched sorted-dst offsets) for real graphs.
    src, dst = edge_index[0], edge_index[1]
    a = jnp.zeros((n_dst, n_src), jnp.float32).at[dst, src].add(1.0)
    deg = a.sum(axis=1, keepdims=True)
    a = a / jnp.maximum(deg, 1.0)
    return _pad2(a, n_dst_pad, n_src_pad).astype(jnp.bfloat16)


def init_params(key, f_user, f_movie, hidden):
    def lin(k, fan_in, fan_out):
        return jax.random.normal(k, (fan_in, fan_out), jnp.float32) * 0.1

    ks = jax.random.split(key, 16)
    return {
        # conv1, edge type ('user','rates','movie'):  user(src) -> movie(dst)
        "c1_um_wl": lin(ks[0], f_user, hidden),
        "c1_um_wr": lin(ks[1], f_movie, hidden),
        "c1_um_b": jnp.zeros((hidden,), jnp.float32),
        # conv1, edge type ('movie','rev_rates','user'): movie(src) -> user(dst)
        "c1_mu_wl": lin(ks[2], f_movie, hidden),
        "c1_mu_wr": lin(ks[3], f_user, hidden),
        "c1_mu_b": jnp.zeros((hidden,), jnp.float32),
        # conv3 (second layer), same edge types, hidden -> hidden
        "c3_um_wl": lin(ks[4], hidden, hidden),
        "c3_um_wr": lin(ks[5], hidden, hidden),
        "c3_um_b": jnp.zeros((hidden,), jnp.float32),
        "c3_mu_wl": lin(ks[6], hidden, hidden),
        "c3_mu_wr": lin(ks[7], hidden, hidden),
        "c3_mu_b": jnp.zeros((hidden,), jnp.float32),
        # EdgeDecoder
        "dec_w1": lin(ks[8], 2 * hidden, 2 * hidden),
        "dec_b1": jnp.zeros((2 * hidden,), jnp.float32),
        "dec_w2": lin(ks[9], 2 * hidden, 1),
        "dec_b2": jnp.zeros((1,), jnp.float32),
    }


def model_forward(params, x_dict, edge_index_dict, edge_label_index):
    x_user, x_movie = x_dict["user"], x_dict["movie"]
    n_user, n_movie = x_user.shape[0], x_movie.shape[0]
    hidden = params["c1_um_b"].shape[0]

    c_pad = _round_up(hidden, 128)
    n_user_pad = _round_up(n_user, 128)
    n_movie_pad = _round_up(n_movie, 128)
    f_user_pad = _round_up(x_user.shape[1], 128)
    f_movie_pad = _round_up(x_movie.shape[1], 128)

    # One-time pad + bf16 cast of node features.
    xu = _pad2(x_user, n_user_pad, f_user_pad).astype(jnp.bfloat16)
    xm = _pad2(x_movie, n_movie_pad, f_movie_pad).astype(jnp.bfloat16)

    # Dense normalized adjacencies, built once (padded, bf16), reused by both layers.
    a_um = mean_adjacency(edge_index_dict[("user", "rates", "movie")],
                          n_user, n_movie, n_user_pad, n_movie_pad)   # [N_movie_p, N_user_p]
    a_mu = mean_adjacency(edge_index_dict[("movie", "rev_rates", "user")],
                          n_movie, n_user, n_movie_pad, n_user_pad)   # [N_user_p, N_movie_p]

    # Fused per-node-type weights: [W_l(outgoing edge) | W_r(incoming edge)],
    # width 2*c_pad so v6e/v7x's 256-wide MXU N dim is filled.
    def fuse(wl, wr, f_pad):
        return jnp.concatenate(
            [_pad2(wl, f_pad, c_pad), _pad2(wr, f_pad, c_pad)], axis=1
        ).astype(jnp.bfloat16)

    w_u1 = fuse(params["c1_um_wl"], params["c1_mu_wr"], f_user_pad)
    w_m1 = fuse(params["c1_mu_wl"], params["c1_um_wr"], f_movie_pad)
    w_u2 = fuse(params["c3_um_wl"], params["c3_mu_wr"], c_pad)
    w_m2 = fuse(params["c3_mu_wl"], params["c3_um_wr"], c_pad)

    b1_um = _pad_bias(params["c1_um_b"], c_pad)
    b1_mu = _pad_bias(params["c1_mu_b"], c_pad)
    b3_um = _pad_bias(params["c3_um_b"], c_pad)
    b3_mu = _pad_bias(params["c3_mu_b"], c_pad)

    # ---- GNNEncoder layer 1 (+relu); padded bf16 handoff, no re-pad/slice ----
    hu_both = project(xu, w_u1)     # (N_user_p, 2*c_pad): [msg for movie | self for user]
    hm_both = project(xm, w_m1)     # (N_movie_p, 2*c_pad): [msg for user | self for movie]
    h_movie = sage_agg(a_um, hu_both, hm_both, b1_um, c_pad=c_pad, relu=True)
    h_user = sage_agg(a_mu, hm_both, hu_both, b1_mu, c_pad=c_pad, relu=True)

    # ---- layer 2 (conv3, no relu) ----
    zu_both = project(h_user, w_u2)
    zm_both = project(h_movie, w_m2)
    z_movie = sage_agg(a_um, zu_both, zm_both, b3_um, c_pad=c_pad, relu=False)
    z_user = sage_agg(a_mu, zm_both, zu_both, b3_mu, c_pad=c_pad, relu=False)

    # ---- EdgeDecoder ----
    row, col = edge_label_index[0], edge_label_index[1]
    e = row.shape[0]
    e_pad = _round_up(e, 128)
    # TODO(synk): fuse this gather/concat into the decoder kernel via scalar
    # prefetch (pl.Element row blocks) to avoid the HBM round trip on large E.
    z = jnp.concatenate([z_user[row], z_movie[col]], axis=-1)       # (E, 2*c_pad) bf16
    z = jnp.pad(z, ((0, e_pad - e), (0, 0)))

    # Decoder weights remapped onto the padded z layout (user dims at cols
    # [0:H], movie dims at cols [c_pad:c_pad+H]); only the final scores are sliced.
    h1_pad = _round_up(2 * hidden, 128)
    w1 = params["dec_w1"]
    w1_p = jnp.zeros((2 * c_pad, h1_pad), jnp.float32)
    w1_p = w1_p.at[:hidden, :2 * hidden].set(w1[:hidden])
    w1_p = w1_p.at[c_pad:c_pad + hidden, :2 * hidden].set(w1[hidden:])
    w1_p = w1_p.astype(jnp.bfloat16)
    b1_p = _pad_bias(params["dec_b1"], h1_pad)
    w2_p = jnp.pad(params["dec_w2"].reshape(-1),
                   (0, h1_pad - 2 * hidden)).reshape(1, -1).astype(jnp.float32)
    b2_p = params["dec_b2"].reshape(1).astype(jnp.float32)

    scores = edge_decoder(z, w1_p, b1_p, w2_p, b2_p)
    return scores[:e]


# ----------------------------------------------------------------------------
# Example run
# ----------------------------------------------------------------------------
if __name__ == "__main__":
    key = jax.random.PRNGKey(0)
    k_xu, k_xm, k_e, k_el, k_p = jax.random.split(key, 5)

    HIDDEN = 16
    N_USER, N_MOVIE = 8, 12
    F_USER, F_MOVIE = 8, 16
    N_EDGES, N_LABEL = 24, 6

    x_dict = {
        "user": jax.random.normal(k_xu, (N_USER, F_USER), jnp.float32),
        "movie": jax.random.normal(k_xm, (N_MOVIE, F_MOVIE), jnp.float32),
    }

    src = jax.random.randint(k_e, (N_EDGES,), 0, N_USER)
    dst = jax.random.randint(jax.random.fold_in(k_e, 1), (N_EDGES,), 0, N_MOVIE)
    e_um = jnp.stack([src, dst])            # ('user','rates','movie')
    e_mu = jnp.stack([dst, src])            # ('movie','rev_rates','user')
    edge_index_dict = {
        ("user", "rates", "movie"): e_um,
        ("movie", "rev_rates", "user"): e_mu,
    }

    lbl_row = jax.random.randint(k_el, (N_LABEL,), 0, N_USER)
    lbl_col = jax.random.randint(jax.random.fold_in(k_el, 1), (N_LABEL,), 0, N_MOVIE)
    edge_label_index = jnp.stack([lbl_row, lbl_col])

    params = init_params(k_p, F_USER, F_MOVIE, HIDDEN)

    fwd = jax.jit(model_forward)
    out = fwd(params, x_dict, edge_index_dict, edge_label_index)
    jax.block_until_ready(out)
    assert out.shape == (N_LABEL,)
    print("KERNEL_OK")
</pallas_src>

<mosaic_0001>
module attributes {stable_mosaic.version = 11 : i64} {
  func.func @_proj_kernel(%arg0: i32, %arg1: i32, %arg2: memref<128x128xbf16, #tpu.memory_space<vmem>>, %arg3: memref<128x256xbf16, #tpu.memory_space<vmem>>, %arg4: memref<128x256xbf16, #tpu.memory_space<vmem>>, %arg5: memref<128x256xf32, #tpu.memory_space<vmem>>) attributes {dimension_semantics = [#tpu.dimension_semantics<parallel>, #tpu.dimension_semantics<arbitrary>], iteration_bounds = array<i64: 1, 1>, scalar_prefetch = 0 : i64, scratch_operands = 1 : i64, tpu.core_type = #tpu.core_type<tc>, window_params = [{transform_indices = @transform_0, window_bounds = array<i64: 128, 128>}, {pipeline_mode = #tpu.pipeline_mode<synchronous>, transform_indices = @transform_1, window_bounds = array<i64: 128, 256>}, {transform_indices = @transform_2, window_bounds = array<i64: 128, 256>}]} {
    %c0_i32 = arith.constant 0 : i32
    %0 = arith.cmpi eq, %arg1, %c0_i32 : i32
    %1 = arith.extui %0 : i1 to i32
    %c0_i32_0 = arith.constant 0 : i32
    %2 = arith.cmpi ne, %1, %c0_i32_0 : i32
    scf.if %2 {
      %cst_9 = arith.constant 0.000000e+00 : f32
      %15 = vector.broadcast %cst_9 : f32 to vector<128x256xf32>
      %c0_10 = arith.constant 0 : index
      %c0_11 = arith.constant 0 : index
      %16 = vector.load %arg5[%c0_10, %c0_11] : memref<128x256xf32, #tpu.memory_space<vmem>>, vector<128x256xf32>
      tpu.vector_store %arg5[%c0_10, %c0_11], %15 {strides = array<i32>} : memref<128x256xf32, #tpu.memory_space<vmem>>, vector<128x256xf32>,
    } else {
    }
    %c128_i32 = arith.constant 128 : i32
    %3 = arith.muli %arg1, %c128_i32 : i32
    %4 = tpu.assume_multiple %3, 128 : i32
    %5 = arith.index_cast %4 : i32 to index
    %c0 = arith.constant 0 : index
    %6 = vector.load %arg3[%5, %c0] : memref<128x256xbf16, #tpu.memory_space<vmem>>, vector<128x256xbf16>
    %c0_1 = arith.constant 0 : index
    %c0_2 = arith.constant 0 : index
    %7 = vector.load %arg5[%c0_1, %c0_2] : memref<128x256xf32, #tpu.memory_space<vmem>>, vector<128x256xf32>
    %c0_3 = arith.constant 0 : index
    %c0_4 = arith.constant 0 : index
    %8 = vector.load %arg2[%c0_3, %c0_4] : memref<128x128xbf16, #tpu.memory_space<vmem>>, vector<128x128xbf16>
    %cst = arith.constant dense<0.000000e+00> : vector<128x256xf32>
    %9 = tpu.matmul %8, %6, %cst {dimension_numbers = #tpu.dot_dimension_numbers<[1], [0], [0], [1], [0, 0, 1, 1], [], []>} : vector<128x128xbf16>, vector<128x256xbf16>, vector<128x256xf32> -> vector<128x256xf32>
    %10 = arith.addf %7, %9 : vector<128x256xf32>
    %c0_5 = arith.constant 0 : index
    %c0_6 = arith.constant 0 : index
    %11 = vector.load %arg5[%c0_5, %c0_6] : memref<128x256xf32, #tpu.memory_space<vmem>>, vector<128x256xf32>
    tpu.vector_store %arg5[%c0_5, %c0_6], %10 {strides = array<i32>} : memref<128x256xf32, #tpu.memory_space<vmem>>, vector<128x256xf32>,
    %c0_i32_7 = arith.constant 0 : i32
    %12 = arith.cmpi eq, %arg1, %c0_i32_7 : i32
    %13 = arith.extui %12 : i1 to i32
    %c0_i32_8 = arith.constant 0 : i32
    %14 = arith.cmpi ne, %13, %c0_i32_8 : i32
    scf.if %14 {
      %c0_9 = arith.constant 0 : index
      %c0_10 = arith.constant 0 : index
      %15 = vector.load %arg5[%c0_9, %c0_10] : memref<128x256xf32, #tpu.memory_space<vmem>>, vector<128x256xf32>
      %16 = arith.truncf %15 : vector<128x256xf32> to vector<128x256xbf16>
      %c0_11 = arith.constant 0 : index
      %c0_12 = arith.constant 0 : index
      %17 = vector.load %arg4[%c0_11, %c0_12] : memref<128x256xbf16, #tpu.memory_space<vmem>>, vector<128x256xbf16>
      tpu.vector_store %arg4[%c0_11, %c0_12], %16 {strides = array<i32>} : memref<128x256xbf16, #tpu.memory_space<vmem>>, vector<128x256xbf16>,
    } else {
    }
    return
  }
  func.func @transform_0(%arg0: i32, %arg1: i32) -> (i32, i32) {
    %c0_i32 = arith.constant 0 : i32
    return %arg0, %arg1 : i32, i32
  }
  func.func @transform_1(%arg0: i32, %arg1: i32) -> (i32, i32) {
    %c0_i32 = arith.constant 0 : i32
    %c0_i32_0 = arith.constant 0 : i32
    %c0_i32_1 = arith.constant 0 : i32
    return %c0_i32, %c0_i32_0 : i32, i32
  }
  func.func @transform_2(%arg0: i32, %arg1: i32) -> (i32, i32) {
    %c0_i32 = arith.constant 0 : i32
    %c0_i32_0 = arith.constant 0 : i32
    return %arg0, %c0_i32 : i32, i32
  }
}

module attributes {stable_mosaic.version = 11 : i64} {
  func.func @_sage_agg_kernel(%arg0: i32, %arg1: i32, %arg2: memref<128x128xbf16, #tpu.memory_space<vmem>>, %arg3: memref<128x128xbf16, #tpu.memory_space<vmem>>, %arg4: memref<128x128xbf16, #tpu.memory_space<vmem>>, %arg5: memref<1x128xf32, #tpu.memory_space<vmem>>, %arg6: memref<128x128xbf16, #tpu.memory_space<vmem>>, %arg7: memref<128x128xf32, #tpu.memory_space<vmem>>) attributes {dimension_semantics = [#tpu.dimension_semantics<parallel>, #tpu.dimension_semantics<arbitrary>], iteration_bounds = array<i64: 1, 1>, scalar_prefetch = 0 : i64, scratch_operands = 1 : i64, tpu.core_type = #tpu.core_type<tc>, window_params = [{transform_indices = @transform_0, window_bounds = array<i64: 128, 128>}, {transform_indices = @transform_1, window_bounds = array<i64: 128, 128>}, {transform_indices = @transform_2, window_bounds = array<i64: 128, 128>}, {pipeline_mode = #tpu.pipeline_mode<synchronous>, transform_indices = @transform_3, window_bounds = array<i64: 1, 128>}, {transform_indices = @transform_4, window_bounds = array<i64: 128, 128>}]} {
    %c0_i32 = arith.constant 0 : i32
    %0 = arith.cmpi eq, %arg1, %c0_i32 : i32
    %1 = arith.extui %0 : i1 to i32
    %c0_i32_0 = arith.constant 0 : i32
    %2 = arith.cmpi ne, %1, %c0_i32_0 : i32
    scf.if %2 {
      %cst_9 = arith.constant 0.000000e+00 : f32
      %15 = vector.broadcast %cst_9 : f32 to vector<128x128xf32>
      %c0_10 = arith.constant 0 : index
      %c0_11 = arith.constant 0 : index
      %16 = vector.load %arg7[%c0_10, %c0_11] : memref<128x128xf32, #tpu.memory_space<vmem>>, vector<128x128xf32>
      tpu.vector_store %arg7[%c0_10, %c0_11], %15 {strides = array<i32>} : memref<128x128xf32, #tpu.memory_space<vmem>>, vector<128x128xf32>,
    } else {
    }
    %c128_i32 = arith.constant 128 : i32
    %3 = arith.muli %arg1, %c128_i32 : i32
    %4 = tpu.assume_multiple %3, 128 : i32
    %5 = arith.index_cast %4 : i32 to index
    %c0 = arith.constant 0 : index
    %6 = vector.load %arg3[%5, %c0] : memref<128x128xbf16, #tpu.memory_space<vmem>>, vector<128x128xbf16>
    %c0_1 = arith.constant 0 : index
    %c0_2 = arith.constant 0 : index
    %7 = vector.load %arg7[%c0_1, %c0_2] : memref<128x128xf32, #tpu.memory_space<vmem>>, vector<128x128xf32>
    %c0_3 = arith.constant 0 : index
    %c0_4 = arith.constant 0 : index
    %8 = vector.load %arg2[%c0_3, %c0_4] : memref<128x128xbf16, #tpu.memory_space<vmem>>, vector<128x128xbf16>
    %cst = arith.constant dense<0.000000e+00> : vector<128x128xf32>
    %9 = tpu.matmul %8, %6, %cst {dimension_numbers = #tpu.dot_dimension_numbers<[1], [0], [0], [1], [0, 0, 1, 1], [], []>} : vector<128x128xbf16>, vector<128x128xbf16>, vector<128x128xf32> -> vector<128x128xf32>
    %10 = arith.addf %7, %9 : vector<128x128xf32>
    %c0_5 = arith.constant 0 : index
    %c0_6 = arith.constant 0 : index
    %11 = vector.load %arg7[%c0_5, %c0_6] : memref<128x128xf32, #tpu.memory_space<vmem>>, vector<128x128xf32>
    tpu.vector_store %arg7[%c0_5, %c0_6], %10 {strides = array<i32>} : memref<128x128xf32, #tpu.memory_space<vmem>>, vector<128x128xf32>,
    %c0_i32_7 = arith.constant 0 : i32
    %12 = arith.cmpi eq, %arg1, %c0_i32_7 : i32
    %13 = arith.extui %12 : i1 to i32
    %c0_i32_8 = arith.constant 0 : i32
    %14 = arith.cmpi ne, %13, %c0_i32_8 : i32
    scf.if %14 {
      %c0_9 = arith.constant 0 : index
      %c0_10 = arith.constant 0 : index
      %15 = vector.load %arg7[%c0_9, %c0_10] : memref<128x128xf32, #tpu.memory_space<vmem>>, vector<128x128xf32>
      %c0_11 = arith.constant 0 : index
      %c0_12 = arith.constant 0 : index
      %16 = vector.load %arg4[%c0_11, %c0_12] : memref<128x128xbf16, #tpu.memory_space<vmem>>, vector<128x128xbf16>
      %17 = arith.extf %16 : vector<128x128xbf16> to vector<128x128xf32>
      %18 = arith.addf %15, %17 : vector<128x128xf32>
      %c0_13 = arith.constant 0 : index
      %c0_14 = arith.constant 0 : index
      %19 = vector.load %arg5[%c0_13, %c0_14] : memref<1x128xf32, #tpu.memory_space<vmem>>, vector<1x128xf32>
      %20 = vector.broadcast %19 : vector<1x128xf32> to vector<128x128xf32>
      %21 = arith.addf %18, %20 : vector<128x128xf32>
      %cst_15 = arith.constant 0.000000e+00 : f32
      %22 = vector.broadcast %cst_15 : f32 to vector<128x128xf32>
      %23 = arith.maximumf %21, %22 : vector<128x128xf32>
      %24 = arith.truncf %23 : vector<128x128xf32> to vector<128x128xbf16>
      %c0_16 = arith.constant 0 : index
      %c0_17 = arith.constant 0 : index
      %25 = vector.load %arg6[%c0_16, %c0_17] : memref<128x128xbf16, #tpu.memory_space<vmem>>, vector<128x128xbf16>
      tpu.vector_store %arg6[%c0_16, %c0_17], %24 {strides = array<i32>} : memref<128x128xbf16, #tpu.memory_space<vmem>>, vector<128x128xbf16>,
    } else {
    }
    return
  }
  func.func @transform_0(%arg0: i32, %arg1: i32) -> (i32, i32) {
    %c0_i32 = arith.constant 0 : i32
    return %arg0, %arg1 : i32, i32
  }
  func.func @transform_1(%arg0: i32, %arg1: i32) -> (i32, i32) {
    %c0_i32 = arith.constant 0 : i32
    %c0_i32_0 = arith.constant 0 : i32
    %c0_i32_1 = arith.constant 0 : i32
    return %c0_i32, %c0_i32_0 : i32, i32
  }
  func.func @transform_2(%arg0: i32, %arg1: i32) -> (i32, i32) {
    %c1_i32 = arith.constant 1 : i32
    %c0_i32 = arith.constant 0 : i32
    return %arg0, %c1_i32 : i32, i32
  }
  func.func @transform_3(%arg0: i32, %arg1: i32) -> (i32, i32) {
    %c0_i32 = arith.constant 0 : i32
    %c0_i32_0 = arith.constant 0 : i32
    %c0_i32_1 = arith.constant 0 : i32
    return %c0_i32, %c0_i32_0 : i32, i32
  }
  func.func @transform_4(%arg0: i32, %arg1: i32) -> (i32, i32) {
    %c0_i32 = arith.constant 0 : i32
    %c0_i32_0 = arith.constant 0 : i32
    return %arg0, %c0_i32 : i32, i32
  }
}

module attributes {stable_mosaic.version = 11 : i64} {
  func.func @_sage_agg_kernel(%arg0: i32, %arg1: i32, %arg2: memref<128x128xbf16, #tpu.memory_space<vmem>>, %arg3: memref<128x128xbf16, #tpu.memory_space<vmem>>, %arg4: memref<128x128xbf16, #tpu.memory_space<vmem>>, %arg5: memref<1x128xf32, #tpu.memory_space<vmem>>, %arg6: memref<128x128xbf16, #tpu.memory_space<vmem>>, %arg7: memref<128x128xf32, #tpu.memory_space<vmem>>) attributes {dimension_semantics = [#tpu.dimension_semantics<parallel>, #tpu.dimension_semantics<arbitrary>], iteration_bounds = array<i64: 1, 1>, scalar_prefetch = 0 : i64, scratch_operands = 1 : i64, tpu.core_type = #tpu.core_type<tc>, window_params = [{transform_indices = @transform_0, window_bounds = array<i64: 128, 128>}, {transform_indices = @transform_1, window_bounds = array<i64: 128, 128>}, {transform_indices = @transform_2, window_bounds = array<i64: 128, 128>}, {pipeline_mode = #tpu.pipeline_mode<synchronous>, transform_indices = @transform_3, window_bounds = array<i64: 1, 128>}, {transform_indices = @transform_4, window_bounds = array<i64: 128, 128>}]} {
    %c0_i32 = arith.constant 0 : i32
    %0 = arith.cmpi eq, %arg1, %c0_i32 : i32
    %1 = arith.extui %0 : i1 to i32
    %c0_i32_0 = arith.constant 0 : i32
    %2 = arith.cmpi ne, %1, %c0_i32_0 : i32
    scf.if %2 {
      %cst_9 = arith.constant 0.000000e+00 : f32
      %15 = vector.broadcast %cst_9 : f32 to vector<128x128xf32>
      %c0_10 = arith.constant 0 : index
      %c0_11 = arith.constant 0 : index
      %16 = vector.load %arg7[%c0_10, %c0_11] : memref<128x128xf32, #tpu.memory_space<vmem>>, vector<128x128xf32>
      tpu.vector_store %arg7[%c0_10, %c0_11], %15 {strides = array<i32>} : memref<128x128xf32, #tpu.memory_space<vmem>>, vector<128x128xf32>,
    } else {
    }
    %c128_i32 = arith.constant 128 : i32
    %3 = arith.muli %arg1, %c128_i32 : i32
    %4 = tpu.assume_multiple %3, 128 : i32
    %5 = arith.index_cast %4 : i32 to index
    %c0 = arith.constant 0 : index
    %6 = vector.load %arg3[%5, %c0] : memref<128x128xbf16, #tpu.memory_space<vmem>>, vector<128x128xbf16>
    %c0_1 = arith.constant 0 : index
    %c0_2 = arith.constant 0 : index
    %7 = vector.load %arg7[%c0_1, %c0_2] : memref<128x128xf32, #tpu.memory_space<vmem>>, vector<128x128xf32>
    %c0_3 = arith.constant 0 : index
    %c0_4 = arith.constant 0 : index
    %8 = vector.load %arg2[%c0_3, %c0_4] : memref<128x128xbf16, #tpu.memory_space<vmem>>, vector<128x128xbf16>
    %cst = arith.constant dense<0.000000e+00> : vector<128x128xf32>
    %9 = tpu.matmul %8, %6, %cst {dimension_numbers = #tpu.dot_dimension_numbers<[1], [0], [0], [1], [0, 0, 1, 1], [], []>} : vector<128x128xbf16>, vector<128x128xbf16>, vector<128x128xf32> -> vector<128x128xf32>
    %10 = arith.addf %7, %9 : vector<128x128xf32>
    %c0_5 = arith.constant 0 : index
    %c0_6 = arith.constant 0 : index
    %11 = vector.load %arg7[%c0_5, %c0_6] : memref<128x128xf32, #tpu.memory_space<vmem>>, vector<128x128xf32>
    tpu.vector_store %arg7[%c0_5, %c0_6], %10 {strides = array<i32>} : memref<128x128xf32, #tpu.memory_space<vmem>>, vector<128x128xf32>,
    %c0_i32_7 = arith.constant 0 : i32
    %12 = arith.cmpi eq, %arg1, %c0_i32_7 : i32
    %13 = arith.extui %12 : i1 to i32
    %c0_i32_8 = arith.constant 0 : i32
    %14 = arith.cmpi ne, %13, %c0_i32_8 : i32
    scf.if %14 {
      %c0_9 = arith.constant 0 : index
      %c0_10 = arith.constant 0 : index
      %15 = vector.load %arg7[%c0_9, %c0_10] : memref<128x128xf32, #tpu.memory_space<vmem>>, vector<128x128xf32>
      %c0_11 = arith.constant 0 : index
      %c0_12 = arith.constant 0 : index
      %16 = vector.load %arg4[%c0_11, %c0_12] : memref<128x128xbf16, #tpu.memory_space<vmem>>, vector<128x128xbf16>
      %17 = arith.extf %16 : vector<128x128xbf16> to vector<128x128xf32>
      %18 = arith.addf %15, %17 : vector<128x128xf32>
      %c0_13 = arith.constant 0 : index
      %c0_14 = arith.constant 0 : index
      %19 = vector.load %arg5[%c0_13, %c0_14] : memref<1x128xf32, #tpu.memory_space<vmem>>, vector<1x128xf32>
      %20 = vector.broadcast %19 : vector<1x128xf32> to vector<128x128xf32>
      %21 = arith.addf %18, %20 : vector<128x128xf32>
      %22 = arith.truncf %21 : vector<128x128xf32> to vector<128x128xbf16>
      %c0_15 = arith.constant 0 : index
      %c0_16 = arith.constant 0 : index
      %23 = vector.load %arg6[%c0_15, %c0_16] : memref<128x128xbf16, #tpu.memory_space<vmem>>, vector<128x128xbf16>
      tpu.vector_store %arg6[%c0_15, %c0_16], %22 {strides = array<i32>} : memref<128x128xbf16, #tpu.memory_space<vmem>>, vector<128x128xbf16>,
    } else {
    }
    return
  }
  func.func @transform_0(%arg0: i32, %arg1: i32) -> (i32, i32) {
    %c0_i32 = arith.constant 0 : i32
    return %arg0, %arg1 : i32, i32
  }
  func.func @transform_1(%arg0: i32, %arg1: i32) -> (i32, i32) {
    %c0_i32 = arith.constant 0 : i32
    %c0_i32_0 = arith.constant 0 : i32
    %c0_i32_1 = arith.constant 0 : i32
    return %c0_i32, %c0_i32_0 : i32, i32
  }
  func.func @transform_2(%arg0: i32, %arg1: i32) -> (i32, i32) {
    %c1_i32 = arith.constant 1 : i32
    %c0_i32 = arith.constant 0 : i32
    return %arg0, %c1_i32 : i32, i32
  }
  func.func @transform_3(%arg0: i32, %arg1: i32) -> (i32, i32) {
    %c0_i32 = arith.constant 0 : i32
    %c0_i32_0 = arith.constant 0 : i32
    %c0_i32_1 = arith.constant 0 : i32
    return %c0_i32, %c0_i32_0 : i32, i32
  }
  func.func @transform_4(%arg0: i32, %arg1: i32) -> (i32, i32) {
    %c0_i32 = arith.constant 0 : i32
    %c0_i32_0 = arith.constant 0 : i32
    return %arg0, %c0_i32 : i32, i32
  }
}

module attributes {stable_mosaic.version = 11 : i64} {
  func.func @_decoder_kernel(%arg0: i32, %arg1: memref<128x256xbf16, #tpu.memory_space<vmem>>, %arg2: memref<256x128xbf16, #tpu.memory_space<vmem>>, %arg3: memref<1x128xf32, #tpu.memory_space<vmem>>, %arg4: memref<1x128xf32, #tpu.memory_space<vmem>>, %arg5: memref<1xf32, #tpu.memory_space<smem>>, %arg6: memref<8x16xf32, #tpu.memory_space<vmem>>) attributes {dimension_semantics = [#tpu.dimension_semantics<parallel>], iteration_bounds = array<i64: 1>, scalar_prefetch = 0 : i64, scratch_operands = 0 : i64, tpu.core_type = #tpu.core_type<tc>, window_params = [{transform_indices = @transform_0, window_bounds = array<i64: 128, 256>}, {pipeline_mode = #tpu.pipeline_mode<synchronous>, transform_indices = @transform_1, window_bounds = array<i64: 256, 128>}, {pipeline_mode = #tpu.pipeline_mode<synchronous>, transform_indices = @transform_2, window_bounds = array<i64: 1, 128>}, {pipeline_mode = #tpu.pipeline_mode<synchronous>, transform_indices = @transform_3, window_bounds = array<i64: 1, 128>}, {transform_indices = @transform_4, window_bounds = array<i64: 1>}, {transform_indices = @transform_5, window_bounds = array<i64: 8, 16>}]} {
    %c0 = arith.constant 0 : index
    %c0_0 = arith.constant 0 : index
    %0 = vector.load %arg1[%c0, %c0_0] : memref<128x256xbf16, #tpu.memory_space<vmem>>, vector<128x256xbf16>
    %c0_1 = arith.constant 0 : index
    %c0_2 = arith.constant 0 : index
    %1 = vector.load %arg2[%c0_1, %c0_2] : memref<256x128xbf16, #tpu.memory_space<vmem>>, vector<256x128xbf16>
    %cst = arith.constant dense<0.000000e+00> : vector<128x128xf32>
    %2 = tpu.matmul %0, %1, %cst {dimension_numbers = #tpu.dot_dimension_numbers<[1], [0], [0], [1], [0, 0, 1, 1], [], []>} : vector<128x256xbf16>, vector<256x128xbf16>, vector<128x128xf32> -> vector<128x128xf32>
    %c0_3 = arith.constant 0 : index
    %c0_4 = arith.constant 0 : index
    %3 = vector.load %arg3[%c0_3, %c0_4] : memref<1x128xf32, #tpu.memory_space<vmem>>, vector<1x128xf32>
    %4 = vector.broadcast %3 : vector<1x128xf32> to vector<128x128xf32>
    %5 = arith.addf %2, %4 : vector<128x128xf32>
    %cst_5 = arith.constant 0.000000e+00 : f32
    %6 = vector.broadcast %cst_5 : f32 to vector<128x128xf32>
    %7 = arith.maximumf %5, %6 : vector<128x128xf32>
    %8 = vector.shape_cast %7 : vector<128x128xf32> to vector<8x16x128xf32>
    %c0_6 = arith.constant 0 : index
    %c0_7 = arith.constant 0 : index
    %9 = vector.load %arg4[%c0_6, %c0_7] : memref<1x128xf32, #tpu.memory_space<vmem>>, vector<1x128xf32>
    %10 = vector.shape_cast %9 : vector<1x128xf32> to vector<1x1x128xf32>
    %11 = vector.broadcast %10 : vector<1x1x128xf32> to vector<8x16x128xf32>
    %12 = arith.mulf %8, %11 : vector<8x16x128xf32>
    %cst_8 = arith.constant dense<0.000000e+00> : vector<8x16xf32>
    %13 = vector.multi_reduction <add>, %12, %cst_8 [2] : vector<8x16x128xf32> to vector<8x16xf32>
    %c0_9 = arith.constant 0 : index
    %14 = memref.load %arg5[%c0_9] : memref<1xf32, #tpu.memory_space<smem>>
    %15 = vector.broadcast %14 : f32 to vector<8x16xf32>
    %16 = arith.addf %13, %15 : vector<8x16xf32>
    %c0_10 = arith.constant 0 : index
    %c0_11 = arith.constant 0 : index
    %17 = vector.load %arg6[%c0_10, %c0_11] : memref<8x16xf32, #tpu.memory_space<vmem>>, vector<8x16xf32>
    tpu.vector_store %arg6[%c0_10, %c0_11], %16 {strides = array<i32>} : memref<8x16xf32, #tpu.memory_space<vmem>>, vector<8x16xf32>,
    return
  }
  func.func @transform_0(%arg0: i32) -> (i32, i32) {
    %c0_i32 = arith.constant 0 : i32
    %c0_i32_0 = arith.constant 0 : i32
    return %arg0, %c0_i32 : i32, i32
  }
  func.func @transform_1(%arg0: i32) -> (i32, i32) {
    %c0_i32 = arith.constant 0 : i32
    %c0_i32_0 = arith.constant 0 : i32
    %c0_i32_1 = arith.constant 0 : i32
    return %c0_i32, %c0_i32_0 : i32, i32
  }
  func.func @transform_2(%arg0: i32) -> (i32, i32) {
    %c0_i32 = arith.constant 0 : i32
    %c0_i32_0 = arith.constant 0 : i32
    %c0_i32_1 = arith.constant 0 : i32
    return %c0_i32, %c0_i32_0 : i32, i32
  }
  func.func @transform_3(%arg0: i32) -> (i32, i32) {
    %c0_i32 = arith.constant 0 : i32
    %c0_i32_0 = arith.constant 0 : i32
    %c0_i32_1 = arith.constant 0 : i32
    return %c0_i32, %c0_i32_0 : i32, i32
  }
  func.func @transform_4(%arg0: i32) -> i32 {
    %c0_i32 = arith.constant 0 : i32
    %c0_i32_0 = arith.constant 0 : i32
    return %c0_i32 : i32
  }
  func.func @transform_5(%arg0: i32) -> (i32, i32) {
    %c0_i32 = arith.constant 0 : i32
    %c0_i32_0 = arith.constant 0 : i32
    return %arg0, %c0_i32 : i32, i32
  }
}

</mosaic_0001>

<bundles_post_ra>
// kernel: model_forward.10
= control target key start
LH: loop header
LB: loop body
LE: loop exit
PB: predicated region body
PF: predicated region fallthrough
CT: control target
= control target key end

     0   :  { %s799_s1 = inlined_call_operand.vmem [shape: bf16[128,256], index: 1, kind: input, shape index: {}]   ;;  %s800_s0 = inlined_call_operand.vmem [shape: bf16[128,128], index: 0, kind: input, shape index: {}]   ;;  %s801_s2 = inlined_call_operand.vmem [shape: bf16[128,256], index: 2, kind: output, shape index: {}]  }
   0x1   :  { %v570_v0 = vld [vmem:[%s799_s1 + $0x70] sm:$0xf]  ;;  %v591_v1 = vld [vmem:[%s799_s1 + $0x74] sm:$0xf0]  ;;  %v590_v2 = vld [vmem:[%s799_s1 + $0x74] sm:$0xf] }
   0x2   :  { %v571_v3 = vor.u32 %v591_v1, %v570_v0  ;;  %v572_v4 = vld [vmem:[%s799_s1 + $0x78] sm:$0xf0]  ;;  %v562_v5 = vld [vmem:[%s799_s1 + $0x60] sm:$0xf]  ;;  %v589_v6 = vld [vmem:[%s799_s1 + $0x64] sm:$0xf0] }
   0x3   :  { %v575_v7 = vor.u32 %v590_v2, %v572_v4  ;;  %v588_v8 = vld [vmem:[%s799_s1 + $0x64] sm:$0xf]  ;;  %v564_v9 = vld [vmem:[%s799_s1 + $0x68] sm:$0xf0]  ;;  %v563_v10 = vor.u32 %v589_v6, %v562_v5  ;;  %v554_v12 = vld [vmem:[%s799_s1 + $0x50] sm:$0xf] }
   0x4   :  { %245 = vmatpush.bf16.msra.mxu0 %v571_v3  ;;  %600 = vmatpush.bf16.msra.mxu2 %v571_v3  ;;  %v567_v11 = vor.u32 %v588_v8, %v564_v9  ;;  %v587_v13 = vld [vmem:[%s799_s1 + $0x54] sm:$0xf0]  ;;  %v586_v14 = vld [vmem:[%s799_s1 + $0x54] sm:$0xf]  ;;  %v556_v15 = vld [vmem:[%s799_s1 + $0x58] sm:$0xf0] }
   0x5   :  { %294 = vmatpush.bf16.msra.mxu1 %v575_v7  ;;  %608 = vmatpush.bf16.msra.mxu3 %v575_v7  ;;  %v555_v16 = vor.u32 %v587_v13, %v554_v12  ;;  %v559_v17 = vor.u32 %v586_v14, %v556_v15  ;;  %v546_v18 = vld [vmem:[%s799_s1 + $0x40] sm:$0xf]  ;;  %v585_v19 = vld [vmem:[%s799_s1 + $0x44] sm:$0xf0]  ;;  %v584_v20 = vld [vmem:[%s799_s1 + $0x44] sm:$0xf] }
   0x6   :  { %v548_v21 = vld [vmem:[%s799_s1 + $0x48] sm:$0xf0]  ;;  %v547_v22 = vor.u32 %v585_v19, %v546_v18  ;;  %v538_v24 = vld [vmem:[%s799_s1 + $0x30] sm:$0xf]  ;;  %v583_v25 = vld [vmem:[%s799_s1 + $0x34] sm:$0xf0] }
   0x7   :  { %v551_v23 = vor.u32 %v584_v20, %v548_v21  ;;  %v582_v26 = vld [vmem:[%s799_s1 + $0x34] sm:$0xf]  ;;  %v540_v27 = vld [vmem:[%s799_s1 + $0x38] sm:$0xf0]  ;;  %v539_v28 = vor.u32 %v583_v25, %v538_v24  ;;  %v530_v30 = vld [vmem:[%s799_s1 + $0x20] sm:$0xf] }
   0x8   :  { %246 = vmatpush.bf16.msra.mxu0 %v563_v10  ;;  %601 = vmatpush.bf16.msra.mxu2 %v563_v10  ;;  %v543_v29 = vor.u32 %v582_v26, %v540_v27  ;;  %v581_v31 = vld [vmem:[%s799_s1 + $0x24] sm:$0xf0]  ;;  %v580_v32 = vld [vmem:[%s799_s1 + $0x24] sm:$0xf]  ;;  %v532_v33 = vld [vmem:[%s799_s1 + $0x28] sm:$0xf0] }
   0x9   :  { %295 = vmatpush.bf16.msra.mxu1 %v567_v11  ;;  %609 = vmatpush.bf16.msra.mxu3 %v567_v11  ;;  %v531_v34 = vor.u32 %v581_v31, %v530_v30  ;;  %v535_v35 = vor.u32 %v580_v32, %v532_v33  ;;  %v522_v36 = vld [vmem:[%s799_s1 + $0x10] sm:$0xf]  ;;  %v579_v37 = vld [vmem:[%s799_s1 + $0x14] sm:$0xf0]  ;;  %v578_v38 = vld [vmem:[%s799_s1 + $0x14] sm:$0xf] }
   0xa   :  { %v524_v39 = vld [vmem:[%s799_s1 + $0x18] sm:$0xf0]  ;;  %v523_v40 = vor.u32 %v579_v37, %v522_v36  ;;  %v514_v42 = vld [vmem:[%s799_s1] sm:$0xf]  ;;  %v577_v43 = vld [vmem:[%s799_s1 + $0x4] sm:$0xf0] }
   0xb   :  { %v527_v41 = vor.u32 %v578_v38, %v524_v39  ;;  %v576_v44 = vld [vmem:[%s799_s1 + $0x4] sm:$0xf]  ;;  %v516_v45 = vld [vmem:[%s799_s1 + $0x8] sm:$0xf0]  ;;  %v515_v46 = vor.u32 %v577_v43, %v514_v42  ;;  %v594_v52 = vld [vmem:[%s800_s0 + $0x10] sm:$0xff] }
   0xc   :  { %247 = vmatpush.bf16.msra.mxu0 %v555_v16  ;;  %602 = vmatpush.bf16.msra.mxu2 %v555_v16  ;;  %v519_v47 = vor.u32 %v576_v44, %v516_v45  ;;  %v592_v48 = vld [vmem:[%s800_s0] sm:$0xff]  ;;  %v593_v50 = vld [vmem:[%s800_s0 + $0x8] sm:$0xff]  ;;  %v598_v53 = vld [vmem:[%s800_s0 + $0x30] sm:$0xff] }
   0xd   :  { %296 = vmatpush.bf16.msra.mxu1 %v559_v17  ;;  %610 = vmatpush.bf16.msra.mxu3 %v559_v17  ;;  %v596_v49 = vld [vmem:[%s800_s0 + $0x20] sm:$0xff]  ;;  %v597_v51 = vld [vmem:[%s800_s0 + $0x28] sm:$0xff]  ;;  %v595_v54 = vld [vmem:[%s800_s0 + $0x18] sm:$0xff] }
   0xe   :  { %v599_v55 = vld [vmem:[%s800_s0 + $0x38] sm:$0xff] }
  0x10   :  { %248 = vmatpush.bf16.msra.mxu0 %v547_v22  ;;  %603 = vmatpush.bf16.msra.mxu2 %v547_v22 }
  0x11   :  { %297 = vmatpush.bf16.msra.mxu1 %v551_v23  ;;  %611 = vmatpush.bf16.msra.mxu3 %v551_v23 }
  0x14   :  { %249 = vmatpush.bf16.msra.mxu0 %v539_v28  ;;  %604 = vmatpush.bf16.msra.mxu2 %v539_v28 }
  0x15   :  { %298 = vmatpush.bf16.msra.mxu1 %v543_v29  ;;  %612 = vmatpush.bf16.msra.mxu3 %v543_v29 }
  0x18   :  { %250 = vmatpush.bf16.msra.mxu0 %v531_v34  ;;  %605 = vmatpush.bf16.msra.mxu2 %v531_v34 }
  0x19   :  { %299 = vmatpush.bf16.msra.mxu1 %v535_v35  ;;  %613 = vmatpush.bf16.msra.mxu3 %v535_v35 }
  0x1c   :  { %251 = vmatpush.bf16.msra.mxu0 %v523_v40  ;;  %606 = vmatpush.bf16.msra.mxu2 %v523_v40 }
  0x1d   :  { %300 = vmatpush.bf16.msra.mxu1 %v527_v41  ;;  %614 = vmatpush.bf16.msra.mxu3 %v527_v41 }
  0x20   :  { %252 = vmatpush.bf16.msra.mxu0 %v515_v46  ;;  %607 = vmatpush.bf16.msra.mxu2 %v515_v46 }
  0x21   :  { %301 = vmatpush.bf16.msra.mxu1 %v519_v47  ;;  %615 = vmatpush.bf16.msra.mxu3 %v519_v47 }
  0x23   :  { %253 = vmatmul.bf16.vlgmr.msra.gmra.mxu0 %v592_v48  ;;  %273 = vmatmul.bf16.vlgmr.msra.gmra.mxu2 %v596_v49 }
  0x24   :  { %302 = vmatmul.bf16.vlgmr.msra.gmra.mxu1 %v592_v48  ;;  %322 = vmatmul.bf16.vlgmr.msra.gmra.mxu3 %v596_v49 }
  0x33   :  { %258 = vmatmul.bf16.gmra.mxu0 %v593_v50  ;;  %278 = vmatmul.bf16.gmra.mxu2 %v597_v51 }
  0x34   :  { %307 = vmatmul.bf16.gmra.mxu1 %v593_v50  ;;  %327 = vmatmul.bf16.gmra.mxu3 %v597_v51 }
  0x43   :  { %263 = vmatmul.bf16.gmra.mxu0 %v594_v52  ;;  %283 = vmatmul.bf16.gmra.mxu2 %v598_v53 }
  0x44   :  { %312 = vmatmul.bf16.gmra.mxu1 %v594_v52  ;;  %332 = vmatmul.bf16.gmra.mxu3 %v598_v53 }
  0x53   :  { %268 = vmatmul.bf16.gmra.mxu0 %v595_v54  ;;  %288 = vmatmul.bf16.gmra.mxu2 %v599_v55 }
  0x54   :  { %317 = vmatmul.bf16.gmra.mxu1 %v595_v54  ;;  %337 = vmatmul.bf16.gmra.mxu3 %v599_v55 }
  0xa0   :  { %v254_v56 = vpop.f32.mrf.mxu0 }
  0xa1   :  { %v303_v57 = vpop.f32.mrf.mxu1 }
  0xa2   :  { %v442_v58 = vpack.c.bf16 %v303_v57, %v254_v56 }
  0xa4   :  { %458 = vst [vmem:[%s801_s2] sm:$0xff] %v442_v58 }
  0xa6   :  { %v274_v59 = vpop.f32.mrf.mxu2 }
  0xa7   :  { %v323_v60 = vpop.f32.mrf.mxu3 }
  0xa8   :  { %v450_v61 = vpack.c.bf16 %v323_v60, %v274_v59  ;;  %v256_v62 = vpop.f32.mrf.mxu0 }
  0xa9   :  { %v305_v63 = vpop.f32.mrf.mxu1 }
  0xaa   :  { %466 = vst [vmem:[%s801_s2 + $0x40] sm:$0xff] %v450_v61  ;;  %v443_v0 = vpack.c.bf16 %v305_v63, %v256_v62 }
  0xac   :  { %459 = vst [vmem:[%s801_s2 + $0x8] sm:$0xff] %v443_v0 }
  0xae   :  { %v276_v1 = vpop.f32.mrf.mxu2 }
  0xaf   :  { %v325_v2 = vpop.f32.mrf.mxu3 }
  0xb0   :  { %v451_v3 = vpack.c.bf16 %v325_v2, %v276_v1  ;;  %v259_v4 = vpop.f32.mrf.mxu0 }
  0xb1   :  { %v308_v5 = vpop.f32.mrf.mxu1 }
  0xb2   :  { %467 = vst [vmem:[%s801_s2 + $0x48] sm:$0xff] %v451_v3  ;;  %v444_v6 = vpack.c.bf16 %v308_v5, %v259_v4 }
  0xb4   :  { %460 = vst [vmem:[%s801_s2 + $0x10] sm:$0xff] %v444_v6 }
  0xb6   :  { %v279_v7 = vpop.f32.mrf.mxu2 }
  0xb7   :  { %v328_v8 = vpop.f32.mrf.mxu3 }
  0xb8   :  { %v452_v9 = vpack.c.bf16 %v328_v8, %v279_v7  ;;  %v261_v10 = vpop.f32.mrf.mxu0 }
  0xb9   :  { %v310_v11 = vpop.f32.mrf.mxu1 }
  0xba   :  { %468 = vst [vmem:[%s801_s2 + $0x50] sm:$0xff] %v452_v9  ;;  %v445_v12 = vpack.c.bf16 %v310_v11, %v261_v10 }
  0xbc   :  { %461 = vst [vmem:[%s801_s2 + $0x18] sm:$0xff] %v445_v12 }
  0xbe   :  { %v281_v13 = vpop.f32.mrf.mxu2 }
  0xbf   :  { %v330_v14 = vpop.f32.mrf.mxu3 }
  0xc0   :  { %v453_v15 = vpack.c.bf16 %v330_v14, %v281_v13  ;;  %v264_v16 = vpop.f32.mrf.mxu0 }
  0xc1   :  { %v313_v17 = vpop.f32.mrf.mxu1 }
  0xc2   :  { %469 = vst [vmem:[%s801_s2 + $0x58] sm:$0xff] %v453_v15  ;;  %v446_v18 = vpack.c.bf16 %v313_v17, %v264_v16 }
  0xc4   :  { %462 = vst [vmem:[%s801_s2 + $0x20] sm:$0xff] %v446_v18 }
  0xc6   :  { %v284_v19 = vpop.f32.mrf.mxu2 }
  0xc7   :  { %v333_v20 = vpop.f32.mrf.mxu3 }
  0xc8   :  { %v454_v21 = vpack.c.bf16 %v333_v20, %v284_v19  ;;  %v266_v22 = vpop.f32.mrf.mxu0 }
  0xc9   :  { %v315_v23 = vpop.f32.mrf.mxu1 }
  0xca   :  { %470 = vst [vmem:[%s801_s2 + $0x60] sm:$0xff] %v454_v21  ;;  %v447_v24 = vpack.c.bf16 %v315_v23, %v266_v22 }
  0xcc   :  { %463 = vst [vmem:[%s801_s2 + $0x28] sm:$0xff] %v447_v24 }
  0xce   :  { %v286_v25 = vpop.f32.mrf.mxu2 }
  0xcf   :  { %v335_v26 = vpop.f32.mrf.mxu3 }
  0xd0   :  { %v455_v27 = vpack.c.bf16 %v335_v26, %v286_v25  ;;  %v269_v28 = vpop.f32.mrf.mxu0 }
  0xd1   :  { %v318_v29 = vpop.f32.mrf.mxu1 }
  0xd2   :  { %471 = vst [vmem:[%s801_s2 + $0x68] sm:$0xff] %v455_v27  ;;  %v448_v30 = vpack.c.bf16 %v318_v29, %v269_v28 }
  0xd4   :  { %464 = vst [vmem:[%s801_s2 + $0x30] sm:$0xff] %v448_v30 }
  0xd6   :  { %v289_v31 = vpop.f32.mrf.mxu2 }
  0xd7   :  { %v338_v32 = vpop.f32.mrf.mxu3 }
  0xd8   :  { %v456_v33 = vpack.c.bf16 %v338_v32, %v289_v31  ;;  %v271_v34 = vpop.f32.mrf.mxu0 }
  0xd9   :  { %v320_v35 = vpop.f32.mrf.mxu1 }
  0xda   :  { %472 = vst [vmem:[%s801_s2 + $0x70] sm:$0xff] %v456_v33  ;;  %v449_v36 = vpack.c.bf16 %v320_v35, %v271_v34 }
  0xdc   :  { %465 = vst [vmem:[%s801_s2 + $0x38] sm:$0xff] %v449_v36 }
  0xde   :  { %v291_v37 = vpop.f32.mrf.mxu2 }
  0xdf   :  { %v340_v38 = vpop.f32.mrf.mxu3 }
  0xe0   :  { %v457_v39 = vpack.c.bf16 %v340_v38, %v291_v37 }
  0xe2   :  { %473 = vst [vmem:[%s801_s2 + $0x78] sm:$0xff] %v457_v39 }

// kernel: model_forward.11
= control target key start
LH: loop header
LB: loop body
LE: loop exit
PB: predicated region body
PF: predicated region fallthrough
CT: control target
= control target key end

     0   :  { %s1020_s0 = inlined_call_operand.vmem [shape: bf16[128,128], index: 0, kind: input, shape index: {}]   ;;  %s1021_s1 = inlined_call_operand.vmem [shape: bf16[128,256], index: 1, kind: input, shape index: {}]   ;;  %s1022_s2 = inlined_call_operand.vmem [shape: bf16[128,256], index: 2, kind: input, shape index: {}]   ;;  %s1023_s3 = inlined_call_operand.vmem [shape: f32[1,128], index: 3, kind: input, shape index: {}]   ;;  %s1024_s4 = inlined_call_operand.vmem [shape: bf16[128,128], index: 4, kind: output, shape index: {}]  }
   0x1   :  { %v57_v0 = vld [vmem:[%s1021_s1 + $0x70] sm:$0xf]  ;;  %v59_v1 = vld [vmem:[%s1021_s1 + $0x78] sm:$0xf]  ;;  %v53_v2 = vld [vmem:[%s1021_s1 + $0x60] sm:$0xf] }
   0x2   :  { %58 = vst [vmem:[#allocation3 + $0x38] sm:$0xf] %v57_v0  ;;  %v55_v3 = vld [vmem:[%s1021_s1 + $0x68] sm:$0xf]  ;;  %v49_v4 = vld [vmem:[%s1021_s1 + $0x50] sm:$0xf] }
   0x3   :  { %60 = vst [vmem:[#allocation3 + $0x3c] sm:$0xf] %v59_v1  ;;  %v51_v5 = vld [vmem:[%s1021_s1 + $0x58] sm:$0xf]  ;;  %v45_v6 = vld [vmem:[%s1021_s1 + $0x40] sm:$0xf] }
   0x4   :  { %54 = vst [vmem:[#allocation3 + $0x30] sm:$0xf] %v53_v2  ;;  %v47_v7 = vld [vmem:[%s1021_s1 + $0x48] sm:$0xf]  ;;  %v41_v8 = vld [vmem:[%s1021_s1 + $0x30] sm:$0xf] }
   0x5   :  { %56 = vst [vmem:[#allocation3 + $0x34] sm:$0xf] %v55_v3  ;;  %v43_v9 = vld [vmem:[%s1021_s1 + $0x38] sm:$0xf]  ;;  %v37_v10 = vld [vmem:[%s1021_s1 + $0x20] sm:$0xf] }
   0x6   :  { %50 = vst [vmem:[#allocation3 + $0x28] sm:$0xf] %v49_v4  ;;  %v39_v12 = vld [vmem:[%s1021_s1 + $0x28] sm:$0xf]  ;;  %v33_v13 = vld [vmem:[%s1021_s1 + $0x10] sm:$0xf] }
   0x7   :  { %52 = vst [vmem:[#allocation3 + $0x2c] sm:$0xf] %v51_v5  ;;  %v35_v15 = vld [vmem:[%s1021_s1 + $0x18] sm:$0xf]  ;;  %v29_v16 = vld [vmem:[%s1021_s1] sm:$0xf] }
   0x8   :  { %46 = vst [vmem:[#allocation3 + $0x20] sm:$0xf] %v45_v6  ;;  %v31_v17 = vld [vmem:[%s1021_s1 + $0x8] sm:$0xf]  ;;  %v623_v22 = vld [vmem:[%s1022_s2 + $0x4] sm:$0xf] }
   0x9   :  { %48 = vst [vmem:[#allocation3 + $0x24] sm:$0xf] %v47_v7  ;;  %v624_v23 = vld [vmem:[%s1022_s2 + $0xc] sm:$0xf]  ;;  %v711_v26 = vld [vmem:[%s1020_s0] sm:$0xff]  ;;  %v713_v27 = vld [vmem:[%s1020_s0 + $0x10] sm:$0xff] }
   0xa   :  { %v710_v11 = vld [vmem:[#allocation3 + $0x38] sm:$0xff]  ;;  %42 = vst [vmem:[#allocation3 + $0x18] sm:$0xf] %v41_v8  ;;  %v715_v28 = vld [vmem:[%s1020_s0 + $0x20] sm:$0xff]  ;;  %v717_v29 = vld [vmem:[%s1020_s0 + $0x30] sm:$0xff] }
   0xb   :  { %44 = vst [vmem:[#allocation3 + $0x1c] sm:$0xf] %v43_v9  ;;  %393 = vmatpush.bf16.msra.mxu0 %v710_v11  ;;  %805 = vmatpush.bf16.msra.mxu1 %v710_v11  ;;  %v712_v30 = vld [vmem:[%s1020_s0 + $0x8] sm:$0xff]  ;;  %v714_v31 = vld [vmem:[%s1020_s0 + $0x18] sm:$0xff]  ;;  %v627_v34 = vld [vmem:[%s1022_s2 + $0x24] sm:$0xf] }
   0xc   :  { %v709_v14 = vld [vmem:[#allocation3 + $0x30] sm:$0xff]  ;;  %38 = vst [vmem:[#allocation3 + $0x10] sm:$0xf] %v37_v10  ;;  %806 = vmatpush.bf16.msra.mxu2 %v710_v11  ;;  %807 = vmatpush.bf16.msra.mxu3 %v710_v11  ;;  %v716_v32 = vld [vmem:[%s1020_s0 + $0x28] sm:$0xff]  ;;  %v718_v33 = vld [vmem:[%s1020_s0 + $0x38] sm:$0xff] }
   0xd   :  { %40 = vst [vmem:[#allocation3 + $0x14] sm:$0xf] %v39_v12  ;;  %v628_v35 = vld [vmem:[%s1022_s2 + $0x2c] sm:$0xf]  ;;  %v631_v36 = vld [vmem:[%s1022_s2 + $0x44] sm:$0xf] }
   0xe   :  { %34 = vst [vmem:[#allocation3 + $0x8] sm:$0xf] %v33_v13  ;;  %v708_v18 = vld [vmem:[#allocation3 + $0x28] sm:$0xff]  ;;  %v635_v38 = vld [vmem:[%s1022_s2 + $0x64] sm:$0xf] }
   0xf   :  { %36 = vst [vmem:[#allocation3 + $0xc] sm:$0xf] %v35_v15  ;;  %394 = vmatpush.bf16.msra.mxu0 %v709_v14  ;;  %808 = vmatpush.bf16.msra.mxu1 %v709_v14  ;;  %v632_v37 = vld [vmem:[%s1022_s2 + $0x4c] sm:$0xf]  ;;  %v625_v40 = vld [vmem:[%s1022_s2 + $0x14] sm:$0xf] }
  0x10   :  { %30 = vst [vmem:[#allocation3] sm:$0xf] %v29_v16  ;;  %809 = vmatpush.bf16.msra.mxu2 %v709_v14  ;;  %810 = vmatpush.bf16.msra.mxu3 %v709_v14  ;;  %v707_v19 = vld [vmem:[#allocation3 + $0x20] sm:$0xff]  ;;  %v636_v39 = vld [vmem:[%s1022_s2 + $0x6c] sm:$0xf] }
  0x11   :  { %32 = vst [vmem:[#allocation3 + $0x4] sm:$0xf] %v31_v17  ;;  %v626_v41 = vld [vmem:[%s1022_s2 + $0x1c] sm:$0xf]  ;;  %v629_v42 = vld [vmem:[%s1022_s2 + $0x34] sm:$0xf] }
  0x12   :  { %v706_v20 = vld [vmem:[#allocation3 + $0x18] sm:$0xff]  ;;  %134 = vst [vmem:[#allocation4] sm:$0xf] %v623_v22  ;;  %v633_v44 = vld [vmem:[%s1022_s2 + $0x54] sm:$0xf] }
  0x13   :  { %395 = vmatpush.bf16.msra.mxu0 %v708_v18  ;;  %811 = vmatpush.bf16.msra.mxu1 %v708_v18  ;;  %136 = vst [vmem:[#allocation4 + $0x4] sm:$0xf] %v624_v23  ;;  %v630_v43 = vld [vmem:[%s1022_s2 + $0x3c] sm:$0xf]  ;;  %v637_v46 = vld [vmem:[%s1022_s2 + $0x74] sm:$0xf] }
  0x14   :  { %812 = vmatpush.bf16.msra.mxu2 %v708_v18  ;;  %813 = vmatpush.bf16.msra.mxu3 %v708_v18  ;;  %v705_v21 = vld [vmem:[#allocation3 + $0x10] sm:$0xff]  ;;  %142 = vst [vmem:[#allocation4 + $0x10] sm:$0xf] %v627_v34  ;;  %v634_v45 = vld [vmem:[%s1022_s2 + $0x5c] sm:$0xf] }
  0x15   :  { %144 = vst [vmem:[#allocation4 + $0x14] sm:$0xf] %v628_v35  ;;  %v638_v47 = vld [vmem:[%s1022_s2 + $0x7c] sm:$0xf]  ;;  %v978_v55 = vld [vmem:[%s1023_s3] ss:$0 sm:$0xff] }
  0x16   :  { %v704_v24 = vld [vmem:[#allocation3 + $0x8] sm:$0xff]  ;;  %150 = vst [vmem:[#allocation4 + $0x20] sm:$0xf] %v631_v36 }
  0x17   :  { %396 = vmatpush.bf16.msra.mxu0 %v707_v19  ;;  %814 = vmatpush.bf16.msra.mxu1 %v707_v19  ;;  %152 = vst [vmem:[#allocation4 + $0x24] sm:$0xf] %v632_v37 }
  0x18   :  { %815 = vmatpush.bf16.msra.mxu2 %v707_v19  ;;  %816 = vmatpush.bf16.msra.mxu3 %v707_v19  ;;  %v703_v25 = vld [vmem:[#allocation3] sm:$0xff]  ;;  %158 = vst [vmem:[#allocation4 + $0x30] sm:$0xf] %v635_v38 }
  0x19   :  { %160 = vst [vmem:[#allocation4 + $0x34] sm:$0xf] %v636_v39 }
  0x1a   :  { %138 = vst [vmem:[#allocation4 + $0x8] sm:$0xf] %v625_v40  ;;  %v720_v48 = vld [vmem:[#allocation4] sm:$0xff]  }
  0x1b   :  { %397 = vmatpush.bf16.msra.mxu0 %v706_v20  ;;  %817 = vmatpush.bf16.msra.mxu1 %v706_v20  ;;  %140 = vst [vmem:[#allocation4 + $0xc] sm:$0xf] %v626_v41  ;;  %v721_v52 = vunpack.c.l.bf16 %v720_v48  ;;  %v722_v59 = vunpack.c.h.bf16 %v720_v48 }
  0x1c   :  { %818 = vmatpush.bf16.msra.mxu2 %v706_v20  ;;  %819 = vmatpush.bf16.msra.mxu3 %v706_v20  ;;  %146 = vst [vmem:[#allocation4 + $0x18] sm:$0xf] %v629_v42  ;;  %v792_v49 = vld [vmem:[#allocation4 + $0x10] sm:$0xff]  }
  0x1d   :  { %148 = vst [vmem:[#allocation4 + $0x1c] sm:$0xf] %v630_v43  ;;  %v729_v53 = vunpack.c.l.bf16 %v792_v49  ;;  %v730_v60 = vunpack.c.h.bf16 %v792_v49 }
  0x1e   :  { %154 = vst [vmem:[#allocation4 + $0x28] sm:$0xf] %v633_v44  ;;  %v794_v57 = vld [vmem:[#allocation4 + $0x20] sm:$0xff]  }
  0x1f   :  { %398 = vmatpush.bf16.msra.mxu0 %v705_v21  ;;  %820 = vmatpush.bf16.msra.mxu1 %v705_v21  ;;  %156 = vst [vmem:[#allocation4 + $0x2c] sm:$0xf] %v634_v45  ;;  %v737_v63 = vunpack.c.l.bf16 %v794_v57  ;;  %v738_v11 = vunpack.c.h.bf16 %v794_v57 }
  0x20   :  { %821 = vmatpush.bf16.msra.mxu2 %v705_v21  ;;  %822 = vmatpush.bf16.msra.mxu3 %v705_v21  ;;  %162 = vst [vmem:[#allocation4 + $0x38] sm:$0xf] %v637_v46  ;;  %v796_v58 = vld [vmem:[#allocation4 + $0x30] sm:$0xff]  }
  0x21   :  { %164 = vst [vmem:[#allocation4 + $0x3c] sm:$0xf] %v638_v47  ;;  %v745_v0 = vunpack.c.l.bf16 %v796_v58  ;;  %v746_v12 = vunpack.c.h.bf16 %v796_v58 }
  0x22   :  { %v791_v17 = vld [vmem:[#allocation4 + $0x8] sm:$0xff]  }
  0x23   :  { %399 = vmatpush.bf16.msra.mxu0 %v704_v24  ;;  %823 = vmatpush.bf16.msra.mxu1 %v704_v24  ;;  %v726_v41 = vunpack.c.h.bf16 %v791_v17 }
  0x24   :  { %824 = vmatpush.bf16.msra.mxu2 %v704_v24  ;;  %825 = vmatpush.bf16.msra.mxu3 %v704_v24  ;;  %v793_v18 = vld [vmem:[#allocation4 + $0x18] sm:$0xff]  }
  0x25   :  { %v734_v42 = vunpack.c.h.bf16 %v793_v18 }
  0x26   :  { %v795_v39 = vld [vmem:[#allocation4 + $0x28] sm:$0xff]  }
  0x27   :  { %400 = vmatpush.bf16.msra.mxu0 %v703_v25  ;;  %826 = vmatpush.bf16.msra.mxu1 %v703_v25  ;;  %v741_v47 = vunpack.c.l.bf16 %v795_v39 }
  0x28   :  { %827 = vmatpush.bf16.msra.mxu2 %v703_v25  ;;  %828 = vmatpush.bf16.msra.mxu3 %v703_v25  ;;  %v797_v40 = vld [vmem:[#allocation4 + $0x38] sm:$0xff]  }
  0x29   :  { %v749_v48 = vunpack.c.l.bf16 %v797_v40 }
  0x2a   :  { %401 = vmatmul.bf16.vlgmr.msra.gmra.mxu0 %v711_v26  ;;  %411 = vmatmul.bf16.vlgmr.msra.gmra.mxu1 %v713_v27 }
  0x2b   :  { %421 = vmatmul.bf16.vlgmr.msra.gmra.mxu2 %v715_v28  ;;  %431 = vmatmul.bf16.vlgmr.msra.gmra.mxu3 %v717_v29  ;;  %v725_v29 = vunpack.c.l.bf16 %v791_v17 }
  0x3a   :  { %406 = vmatmul.bf16.gmra.mxu0 %v712_v30  ;;  %416 = vmatmul.bf16.gmra.mxu1 %v714_v31  ;;  %v733_v30 = vunpack.c.l.bf16 %v793_v18 }
  0x3b   :  { %426 = vmatmul.bf16.gmra.mxu2 %v716_v32  ;;  %436 = vmatmul.bf16.gmra.mxu3 %v718_v33 }
  0xa7   :  { %v402_v50 = vpop.f32.mrf.mxu0  ;;  %v412_v51 = vpop.f32.mrf.mxu1 }
  0xa8   :  { %v525_v54 = vadd.f32 %v721_v52, %v402_v50  ;;  %v529_v56 = vadd.f32 %v729_v53, %v412_v51 }
  0xaa   :  { %v545_v3 = vadd.f32 %v978_v55, %v525_v54  ;;  %v549_v4 = vadd.f32 %v978_v55, %v529_v56 }
  0xac   :  { %v561_v13 = vmax.f32 %v545_v3, 0.0  ;;  %v565_v14 = vmax.f32 %v549_v4, 0.0 }
  0xae   :  { %v422_v61 = vpop.f32.mrf.mxu2  ;;  %v432_v62 = vpop.f32.mrf.mxu3 }
  0xaf   :  { %v404_v1 = vpop.f32.mrf.mxu0  ;;  %v414_v2 = vpop.f32.mrf.mxu1  ;;  %v533_v9 = vadd.f32 %v737_v63, %v422_v61  ;;  %v537_v10 = vadd.f32 %v745_v0, %v432_v62  ;;  %v750_v61 = vunpack.c.h.bf16 %v797_v40 }
  0xb0   :  { %v526_v5 = vadd.f32 %v722_v59, %v404_v1  ;;  %v530_v6 = vadd.f32 %v730_v60, %v414_v2  ;;  %v742_v60 = vunpack.c.h.bf16 %v795_v39 }
  0xb1   :  { %v553_v23 = vadd.f32 %v978_v55, %v533_v9  ;;  %v557_v24 = vadd.f32 %v978_v55, %v537_v10 }
  0xb2   :  { %v546_v7 = vadd.f32 %v978_v55, %v526_v5  ;;  %v550_v8 = vadd.f32 %v978_v55, %v530_v6 }
  0xb3   :  { %v569_v33 = vmax.f32 %v553_v23, 0.0  ;;  %v573_v34 = vmax.f32 %v557_v24, 0.0 }
  0xb4   :  { %v562_v15 = vmax.f32 %v546_v7, 0.0  ;;  %v566_v16 = vmax.f32 %v550_v8, 0.0 }
  0xb6   :  { %v754_v19 = vpack.c.bf16 %v562_v15, %v561_v13  ;;  %v764_v20 = vpack.c.bf16 %v566_v16, %v565_v14  ;;  %v424_v21 = vpop.f32.mrf.mxu2  ;;  %v434_v22 = vpop.f32.mrf.mxu3 }
  0xb7   :  { %v534_v25 = vadd.f32 %v738_v11, %v424_v21  ;;  %v538_v26 = vadd.f32 %v746_v12, %v434_v22  ;;  %v407_v27 = vpop.f32.mrf.mxu0  ;;  %v417_v28 = vpop.f32.mrf.mxu1 }
  0xb8   :  { %755 = vst [vmem:[%s1024_s4] sm:$0xff] %v754_v19   ;;  %v527_v37 = vadd.f32 %v725_v29, %v407_v27  ;;  %v531_v38 = vadd.f32 %v733_v30, %v417_v28 }
  0xb9   :  { %799 = vst [vmem:[%s1024_s4 + $0x10] sm:$0xff] %v764_v20   ;;  %v554_v31 = vadd.f32 %v978_v55, %v534_v25  ;;  %v558_v32 = vadd.f32 %v978_v55, %v538_v26 }
  0xba   :  { %v547_v51 = vadd.f32 %v978_v55, %v527_v37  ;;  %v551_v52 = vadd.f32 %v978_v55, %v531_v38 }
  0xbb   :  { %v570_v35 = vmax.f32 %v554_v31, 0.0  ;;  %v574_v36 = vmax.f32 %v558_v32, 0.0 }
  0xbc   :  { %v563_v62 = vmax.f32 %v547_v51, 0.0  ;;  %v567_v63 = vmax.f32 %v551_v52, 0.0 }
  0xbd   :  { %v774_v43 = vpack.c.bf16 %v570_v35, %v569_v33  ;;  %v784_v44 = vpack.c.bf16 %v574_v36, %v573_v34 }
  0xbe   :  { %v427_v45 = vpop.f32.mrf.mxu2  ;;  %v437_v46 = vpop.f32.mrf.mxu3 }
  0xbf   :  { %801 = vst [vmem:[%s1024_s4 + $0x20] sm:$0xff] %v774_v43   ;;  %v409_v49 = vpop.f32.mrf.mxu0  ;;  %v419_v50 = vpop.f32.mrf.mxu1  ;;  %v535_v58 = vadd.f32 %v741_v47, %v427_v45  ;;  %v539_v59 = vadd.f32 %v749_v48, %v437_v46 }
  0xc0   :  { %803 = vst [vmem:[%s1024_s4 + $0x30] sm:$0xff] %v784_v44   ;;  %v528_v53 = vadd.f32 %v726_v41, %v409_v49  ;;  %v532_v54 = vadd.f32 %v734_v42, %v419_v50 }
  0xc1   :  { %v555_v6 = vadd.f32 %v978_v55, %v535_v58  ;;  %v559_v7 = vadd.f32 %v978_v55, %v539_v59 }
  0xc2   :  { %v548_v56 = vadd.f32 %v978_v55, %v528_v53  ;;  %v552_v57 = vadd.f32 %v978_v55, %v532_v54 }
  0xc3   :  { %v571_v12 = vmax.f32 %v555_v6, 0.0  ;;  %v575_v13 = vmax.f32 %v559_v7, 0.0 }
  0xc4   :  { %v564_v0 = vmax.f32 %v548_v56, 0.0  ;;  %v568_v1 = vmax.f32 %v552_v57, 0.0 }
  0xc6   :  { %v759_v2 = vpack.c.bf16 %v564_v0, %v563_v62  ;;  %v769_v3 = vpack.c.bf16 %v568_v1, %v567_v63  ;;  %v429_v4 = vpop.f32.mrf.mxu2  ;;  %v439_v5 = vpop.f32.mrf.mxu3 }
  0xc7   :  { %v536_v8 = vadd.f32 %v742_v60, %v429_v4  ;;  %v540_v9 = vadd.f32 %v750_v61, %v439_v5 }
  0xc8   :  { %798 = vst [vmem:[%s1024_s4 + $0x8] sm:$0xff] %v759_v2  }
  0xc9   :  { %800 = vst [vmem:[%s1024_s4 + $0x18] sm:$0xff] %v769_v3   ;;  %v556_v10 = vadd.f32 %v978_v55, %v536_v8  ;;  %v560_v11 = vadd.f32 %v978_v55, %v540_v9 }
  0xcb   :  { %v572_v14 = vmax.f32 %v556_v10, 0.0  ;;  %v576_v15 = vmax.f32 %v560_v11, 0.0 }
  0xcd   :  { %v779_v16 = vpack.c.bf16 %v572_v14, %v571_v12  ;;  %v789_v17 = vpack.c.bf16 %v576_v15, %v575_v13 }
  0xcf   :  { %802 = vst [vmem:[%s1024_s4 + $0x28] sm:$0xff] %v779_v16  }
  0xd0   :  { %804 = vst [vmem:[%s1024_s4 + $0x38] sm:$0xff] %v789_v17  }

// kernel: model_forward.17
= control target key start
LH: loop header
LB: loop body
LE: loop exit
PB: predicated region body
PF: predicated region fallthrough
CT: control target
= control target key end

     0   :  { %vm454_vm0 = vcmask 130112   ;;  %vm477_vm1 = vcmask 1041409   ;;  %vm479_vm2 = vcmask 1042434   ;;  %vm481_vm3 = vcmask 1043459   ;;  %s917_s1 = inlined_call_operand.vmem [shape: bf16[256,128], index: 1, kind: input, shape index: {}]   ;;  %s918_s2 = inlined_call_operand.vmem [shape: f32[1,128], index: 2, kind: input, shape index: {}]   ;;  %s919_s0 = inlined_call_operand.vmem [shape: bf16[128,256], index: 0, kind: input, shape index: {}]   ;;  %s920_s3 = inlined_call_operand.vmem [shape: f32[1,128], index: 3, kind: input, shape index: {}]   ;;  %s921_s4 = inlined_call_operand.<no memory space> [shape: f32[1], index: 4, kind: input, shape index: {}]   ;;  %s922_s5 = inlined_call_operand.vmem [shape: f32[8,16], index: 5, kind: output, shape index: {}]  }
   0x1   :  { %v649_v0 = vld [vmem:[%s917_s1 + $0x38] sm:$0xff]  ;;  %v648_v2 = vld [vmem:[%s917_s1 + $0x30] sm:$0xff]  ;;  %v647_v4 = vld [vmem:[%s917_s1 + $0x28] sm:$0xff]  ;;  %vm483_vm4 = vcmask 1044484   ;;  %vm485_vm5 = vcmask 1045509   ;;  %vm487_vm6 = vcmask 1046534  }
   0x2   :  { %v657_v1 = vld [vmem:[%s917_s1 + $0x78] sm:$0xff]  ;;  %249 = vmatpush.bf16.msra.mxu0 %v649_v0  ;;  %658 = vmatpush.bf16.msra.mxu2 %v649_v0  ;;  %v656_v3 = vld [vmem:[%s917_s1 + $0x70] sm:$0xff]  ;;  %v655_v5 = vld [vmem:[%s917_s1 + $0x68] sm:$0xff]  ;;  %vm489_vm7 = vcmask 1047559   ;;  %vm492_vm8 = vcmask 130048  }
   0x3   :  { %298 = vmatpush.bf16.msra.mxu1 %v657_v1  ;;  %666 = vmatpush.bf16.msra.mxu3 %v657_v1  ;;  %v646_v6 = vld [vmem:[%s917_s1 + $0x20] sm:$0xff]  ;;  %v645_v8 = vld [vmem:[%s917_s1 + $0x18] sm:$0xff]  ;;  %v644_v10 = vld [vmem:[%s917_s1 + $0x10] sm:$0xff] }
   0x4   :  { %v654_v7 = vld [vmem:[%s917_s1 + $0x60] sm:$0xff]  ;;  %v653_v9 = vld [vmem:[%s917_s1 + $0x58] sm:$0xff]  ;;  %v652_v11 = vld [vmem:[%s917_s1 + $0x50] sm:$0xff] }
   0x5   :  { %v643_v12 = vld [vmem:[%s917_s1 + $0x8] sm:$0xff]  ;;  %v642_v14 = vld [vmem:[%s917_s1] sm:$0xff]  ;;  %v508_v28 = vld [vmem:[%s919_s0 + $0x10] sm:$0xf] }
   0x6   :  { %250 = vmatpush.bf16.msra.mxu0 %v648_v2  ;;  %659 = vmatpush.bf16.msra.mxu2 %v648_v2  ;;  %v651_v13 = vld [vmem:[%s917_s1 + $0x48] sm:$0xff]  ;;  %v650_v15 = vld [vmem:[%s917_s1 + $0x40] sm:$0xff]  ;;  %v629_v29 = vld [vmem:[%s919_s0 + $0x14] sm:$0xf0] }
   0x7   :  { %299 = vmatpush.bf16.msra.mxu1 %v656_v3  ;;  %667 = vmatpush.bf16.msra.mxu3 %v656_v3  ;;  %v500_v16 = vld [vmem:[%s919_s0] sm:$0xf]  ;;  %v627_v17 = vld [vmem:[%s919_s0 + $0x4] sm:$0xf0]  ;;  %v626_v20 = vld [vmem:[%s919_s0 + $0x4] sm:$0xf]  ;;  %v509_v36 = vor.u32 %v629_v29, %v508_v28 }
   0x8   :  { %v532_v18 = vld [vmem:[%s919_s0 + $0x40] sm:$0xf]  ;;  %v635_v19 = vld [vmem:[%s919_s0 + $0x44] sm:$0xf0]  ;;  %v502_v21 = vld [vmem:[%s919_s0 + $0x8] sm:$0xf0]  ;;  %v501_v24 = vor.u32 %v627_v17, %v500_v16 }
   0x9   :  { %v634_v22 = vld [vmem:[%s919_s0 + $0x44] sm:$0xf]  ;;  %v534_v23 = vld [vmem:[%s919_s0 + $0x48] sm:$0xf0]  ;;  %v533_v25 = vor.u32 %v635_v19, %v532_v18  ;;  %v505_v26 = vor.u32 %v626_v20, %v502_v21  ;;  %v540_v30 = vld [vmem:[%s919_s0 + $0x50] sm:$0xf] }
   0xa   :  { %251 = vmatpush.bf16.msra.mxu0 %v647_v4  ;;  %660 = vmatpush.bf16.msra.mxu2 %v647_v4  ;;  %v537_v27 = vor.u32 %v634_v22, %v534_v23  ;;  %v637_v31 = vld [vmem:[%s919_s0 + $0x54] sm:$0xf0]  ;;  %v628_v32 = vld [vmem:[%s919_s0 + $0x14] sm:$0xf]  ;;  %v510_v33 = vld [vmem:[%s919_s0 + $0x18] sm:$0xf0] }
   0xb   :  { %300 = vmatpush.bf16.msra.mxu1 %v655_v5  ;;  %668 = vmatpush.bf16.msra.mxu3 %v655_v5  ;;  %v636_v34 = vld [vmem:[%s919_s0 + $0x54] sm:$0xf]  ;;  %v542_v35 = vld [vmem:[%s919_s0 + $0x58] sm:$0xf0]  ;;  %v541_v37 = vor.u32 %v637_v31, %v540_v30  ;;  %v513_v38 = vor.u32 %v628_v32, %v510_v33  ;;  %v516_v40 = vld [vmem:[%s919_s0 + $0x20] sm:$0xf] }
   0xc   :  { %v545_v39 = vor.u32 %v636_v34, %v542_v35  ;;  %v631_v41 = vld [vmem:[%s919_s0 + $0x24] sm:$0xf0]  ;;  %v548_v42 = vld [vmem:[%s919_s0 + $0x60] sm:$0xf]  ;;  %v630_v44 = vld [vmem:[%s919_s0 + $0x24] sm:$0xf] }
   0xd   :  { %v639_v43 = vld [vmem:[%s919_s0 + $0x64] sm:$0xf0]  ;;  %v518_v45 = vld [vmem:[%s919_s0 + $0x28] sm:$0xf0]  ;;  %v638_v46 = vld [vmem:[%s919_s0 + $0x64] sm:$0xf]  ;;  %v517_v48 = vor.u32 %v631_v41, %v516_v40 }
   0xe   :  { %252 = vmatpush.bf16.msra.mxu0 %v646_v6  ;;  %661 = vmatpush.bf16.msra.mxu2 %v646_v6  ;;  %v550_v47 = vld [vmem:[%s919_s0 + $0x68] sm:$0xf0]  ;;  %v549_v49 = vor.u32 %v639_v43, %v548_v42  ;;  %v521_v50 = vor.u32 %v630_v44, %v518_v45  ;;  %v524_v52 = vld [vmem:[%s919_s0 + $0x30] sm:$0xf]  ;;  %v633_v53 = vld [vmem:[%s919_s0 + $0x34] sm:$0xf0] }
   0xf   :  { %301 = vmatpush.bf16.msra.mxu1 %v654_v7  ;;  %669 = vmatpush.bf16.msra.mxu3 %v654_v7  ;;  %v553_v51 = vor.u32 %v638_v46, %v550_v47  ;;  %v556_v54 = vld [vmem:[%s919_s0 + $0x70] sm:$0xf]  ;;  %v641_v55 = vld [vmem:[%s919_s0 + $0x74] sm:$0xf0]  ;;  %v632_v56 = vld [vmem:[%s919_s0 + $0x34] sm:$0xf]  ;;  %v525_v60 = vor.u32 %v633_v53, %v524_v52 }
  0x10   :  { %v526_v57 = vld [vmem:[%s919_s0 + $0x38] sm:$0xf0]  ;;  %v640_v58 = vld [vmem:[%s919_s0 + $0x74] sm:$0xf]  ;;  %v557_v61 = vor.u32 %v641_v55, %v556_v54  ;;  %v853_v0 = vld [vmem:[%s918_s2] ss:$0 sm:$0xff] }
  0x11   :  { %v558_v59 = vld [vmem:[%s919_s0 + $0x78] sm:$0xf0]  ;;  %v529_v62 = vor.u32 %v632_v56, %v526_v57  ;;  %v859_v5 = vld [vmem:[%s920_s3] ss:$0 sm:$0xff] }
  0x12   :  { %253 = vmatpush.bf16.msra.mxu0 %v645_v8  ;;  %662 = vmatpush.bf16.msra.mxu2 %v645_v8  ;;  %v561_v63 = vor.u32 %v640_v58, %v558_v59 }
  0x13   :  { %302 = vmatpush.bf16.msra.mxu1 %v653_v9  ;;  %670 = vmatpush.bf16.msra.mxu3 %v653_v9 }
  0x16   :  { %254 = vmatpush.bf16.msra.mxu0 %v644_v10  ;;  %663 = vmatpush.bf16.msra.mxu2 %v644_v10 }
  0x17   :  { %303 = vmatpush.bf16.msra.mxu1 %v652_v11  ;;  %671 = vmatpush.bf16.msra.mxu3 %v652_v11 }
  0x1a   :  { %255 = vmatpush.bf16.msra.mxu0 %v643_v12  ;;  %664 = vmatpush.bf16.msra.mxu2 %v643_v12 }
  0x1b   :  { %304 = vmatpush.bf16.msra.mxu1 %v651_v13  ;;  %672 = vmatpush.bf16.msra.mxu3 %v651_v13 }
  0x1e   :  { %256 = vmatpush.bf16.msra.mxu0 %v642_v14  ;;  %665 = vmatpush.bf16.msra.mxu2 %v642_v14 }
  0x1f   :  { %305 = vmatpush.bf16.msra.mxu1 %v650_v15  ;;  %673 = vmatpush.bf16.msra.mxu3 %v650_v15 }
  0x21   :  { %257 = vmatmul.bf16.vlgmr.msra.gmra.mxu0 %v501_v24  ;;  %277 = vmatmul.bf16.vlgmr.msra.gmra.mxu2 %v533_v25 }
  0x22   :  { %306 = vmatmul.bf16.vlgmr.msra.gmra.mxu1 %v505_v26  ;;  %326 = vmatmul.bf16.vlgmr.msra.gmra.mxu3 %v537_v27 }
  0x31   :  { %262 = vmatmul.bf16.gmra.mxu0 %v509_v36  ;;  %282 = vmatmul.bf16.gmra.mxu2 %v541_v37 }
  0x32   :  { %311 = vmatmul.bf16.gmra.mxu1 %v513_v38  ;;  %331 = vmatmul.bf16.gmra.mxu3 %v545_v39 }
  0x41   :  { %267 = vmatmul.bf16.gmra.mxu0 %v517_v48  ;;  %287 = vmatmul.bf16.gmra.mxu2 %v549_v49 }
  0x42   :  { %316 = vmatmul.bf16.gmra.mxu1 %v521_v50  ;;  %336 = vmatmul.bf16.gmra.mxu3 %v553_v51 }
  0x51   :  { %272 = vmatmul.bf16.gmra.mxu0 %v525_v60  ;;  %292 = vmatmul.bf16.gmra.mxu2 %v557_v61 }
  0x52   :  { %321 = vmatmul.bf16.gmra.mxu1 %v529_v62  ;;  %341 = vmatmul.bf16.gmra.mxu3 %v561_v63 }
  0x9e   :  { %v258_v1 = vpop.f32.mrf.mxu0 }
  0x9f   :  { %v259_v2 = vadd.f32 %v853_v0, %v258_v1  ;;  %v307_v3 = vpop.f32.mrf.mxu1 }
  0xa1   :  { %v308_v4 = vadd.f32 %v307_v3, %v259_v2 }
  0xa3   :  { %v347_v6 = vmax.f32 %v308_v4, 0.0 }
  0xa4   :  { %v278_v7 = vpop.f32.mrf.mxu2 }
  0xa5   :  { %v279_v8 = vadd.f32 %v853_v0, %v278_v7  ;;  %v327_v9 = vpop.f32.mrf.mxu3  ;;  %v367_v10 = vmul.f32 %v859_v5, %v347_v6 }
  0xa6   :  { %v260_v11 = vpop.f32.mrf.mxu0 }
  0xa7   :  { %v328_v12 = vadd.f32 %v327_v9, %v279_v8  ;;  %v261_v13 = vadd.f32 %v853_v0, %v260_v11  ;;  %v309_v14 = vpop.f32.mrf.mxu1  ;;  %383 = vadd.xlane.f32.xlu0 %v367_v10 }
  0xa9   :  { %v355_v15 = vmax.f32 %v328_v12, 0.0  ;;  %v310_v16 = vadd.f32 %v309_v14, %v261_v13 }
  0xab   :  { %v348_v17 = vmax.f32 %v310_v16, 0.0  ;;  %v375_v18 = vmul.f32 %v859_v5, %v355_v15 }
  0xac   :  { %v280_v19 = vpop.f32.mrf.mxu2 }
  0xad   :  { %v281_v20 = vadd.f32 %v853_v0, %v280_v19  ;;  %v329_v21 = vpop.f32.mrf.mxu3  ;;  %v368_v22 = vmul.f32 %v859_v5, %v348_v17  ;;  %399 = vadd.xlane.f32.xlu2 %v375_v18 }
  0xae   :  { %v263_v23 = vpop.f32.mrf.mxu0 }
  0xaf   :  { %v330_v24 = vadd.f32 %v329_v21, %v281_v20  ;;  %v264_v25 = vadd.f32 %v853_v0, %v263_v23  ;;  %v312_v26 = vpop.f32.mrf.mxu1  ;;  %385 = vadd.xlane.f32.xlu0 %v368_v22 }
  0xb1   :  { %v356_v27 = vmax.f32 %v330_v24, 0.0  ;;  %v313_v28 = vadd.f32 %v312_v26, %v264_v25 }
  0xb3   :  { %v349_v29 = vmax.f32 %v313_v28, 0.0  ;;  %v376_v34 = vmul.f32 %v859_v5, %v356_v27 }
  0xb4   :  { %v283_v30 = vpop.f32.mrf.mxu2 }
  0xb5   :  { %v284_v31 = vadd.f32 %v853_v0, %v283_v30  ;;  %v332_v32 = vpop.f32.mrf.mxu3  ;;  %v369_v33 = vmul.f32 %v859_v5, %v349_v29 }
  0xb6   :  { %v265_v35 = vpop.f32.mrf.mxu0 }
  0xb7   :  { %v333_v36 = vadd.f32 %v332_v32, %v284_v31  ;;  %v314_v37 = vpop.f32.mrf.mxu1  ;;  %387 = vadd.xlane.f32.xlu1 %v369_v33  ;;  %401 = vadd.xlane.f32.xlu0 %v376_v34  ;;  %v266_v39 = vadd.f32 %v853_v0, %v265_v35 }
  0xb9   :  { %v357_v38 = vmax.f32 %v333_v36, 0.0  ;;  %v315_v42 = vadd.f32 %v314_v37, %v266_v39 }
  0xbb   :  { %v377_v40 = vmul.f32 %v859_v5, %v357_v38  ;;  %v350_v49 = vmax.f32 %v315_v42, 0.0 }
  0xbc   :  { %v285_v41 = vpop.f32.mrf.mxu2 }
  0xbd   :  { %v286_v43 = vadd.f32 %v853_v0, %v285_v41  ;;  %v334_v44 = vpop.f32.mrf.mxu3  ;;  %v370_v56 = vmul.f32 %v859_v5, %v350_v49 }
  0xbe   :  { %v268_v45 = vpop.f32.mrf.mxu0 }
  0xbf   :  { %v335_v46 = vadd.f32 %v334_v44, %v286_v43  ;;  %v269_v47 = vadd.f32 %v853_v0, %v268_v45  ;;  %v317_v48 = vpop.f32.mrf.mxu1  ;;  %403 = vadd.xlane.f32.xlu1 %v377_v40  ;;  %v449_v44 = vlaneseq }
  0xc1   :  { %v358_v50 = vmax.f32 %v335_v46, 0.0  ;;  %v318_v51 = vadd.f32 %v317_v48, %v269_v47  ;;  %v416_v47 = vstv %s921_s4  ;;  %v895_v48 = vand.u32 127, %v449_v44 }
  0xc3   :  { %v378_v52 = vmul.f32 %v859_v5, %v358_v50  ;;  %v351_v58 = vmax.f32 %v318_v51, 0.0  ;;  %v452_v50 = vadd.s32 4294967288, %v895_v48 }
  0xc4   :  { %v288_v53 = vpop.f32.mrf.mxu2 }
  0xc5   :  { %v289_v54 = vadd.f32 %v853_v0, %v288_v53  ;;  %v337_v55 = vpop.f32.mrf.mxu3  ;;  %405 = vadd.xlane.f32.xlu2 %v378_v52  ;;  %v371_v1 = vmul.f32 %v859_v5, %v351_v58 }
  0xc6   :  { %v270_v57 = vpop.f32.mrf.mxu0 }
  0xc7   :  { %v338_v59 = vadd.f32 %v337_v55, %v289_v54  ;;  %v271_v60 = vadd.f32 %v853_v0, %v270_v57  ;;  %v319_v61 = vpop.f32.mrf.mxu1  ;;  %389 = vadd.xlane.f32.xlu1 %v370_v56 }
  0xc9   :  { %v359_v62 = vmax.f32 %v338_v59, 0.0  ;;  %v320_v63 = vadd.f32 %v319_v61, %v271_v60 }
  0xcb   :  { %v379_v2 = vmul.f32 %v859_v5, %v359_v62  ;;  %v352_v8 = vmax.f32 %v320_v63, 0.0 }
  0xcc   :  { %v290_v3 = vpop.f32.mrf.mxu2 }
  0xcd   :  { %v291_v4 = vadd.f32 %v853_v0, %v290_v3  ;;  %v339_v6 = vpop.f32.mrf.mxu3  ;;  %391 = vadd.xlane.f32.xlu2 %v371_v1  ;;  %407 = vadd.xlane.f32.xlu0 %v379_v2  ;;  %v372_v15 = vmul.f32 %v859_v5, %v352_v8 }
  0xce   :  { %v273_v7 = vpop.f32.mrf.mxu0 }
  0xcf   :  { %v340_v9 = vadd.f32 %v339_v6, %v291_v4  ;;  %v274_v10 = vadd.f32 %v853_v0, %v273_v7  ;;  %v322_v11 = vpop.f32.mrf.mxu1 }
  0xd1   :  { %v360_v12 = vmax.f32 %v340_v9, 0.0  ;;  %v323_v13 = vadd.f32 %v322_v11, %v274_v10 }
  0xd3   :  { %v353_v14 = vmax.f32 %v323_v13, 0.0  ;;  %v380_v16 = vmul.f32 %v859_v5, %v360_v12 }
  0xd4   :  { %v293_v17 = vpop.f32.mrf.mxu2 }
  0xd5   :  { %v294_v18 = vadd.f32 %v853_v0, %v293_v17  ;;  %v342_v19 = vpop.f32.mrf.mxu3  ;;  %393 = vadd.xlane.f32.xlu2 %v372_v15  ;;  %v373_v20 = vmul.f32 %v859_v5, %v353_v14 }
  0xd6   :  { %v275_v21 = vpop.f32.mrf.mxu0 }
  0xd7   :  { %v343_v22 = vadd.f32 %v342_v19, %v294_v18  ;;  %v276_v23 = vadd.f32 %v853_v0, %v275_v21  ;;  %395 = vadd.xlane.f32.xlu0 %v373_v20  ;;  %v324_v24 = vpop.f32.mrf.mxu1 }
  0xd9   :  { %v361_v25 = vmax.f32 %v343_v22, 0.0  ;;  %v325_v26 = vadd.f32 %v324_v24, %v276_v23 }
  0xdb   :  { %v354_v27 = vmax.f32 %v325_v26, 0.0  ;;  %v381_v28 = vmul.f32 %v859_v5, %v361_v25 }
  0xdc   :  { %v295_v29 = vpop.f32.mrf.mxu2 }
  0xdd   :  { %v296_v30 = vadd.f32 %v853_v0, %v295_v29  ;;  %v374_v31 = vmul.f32 %v859_v5, %v354_v27  ;;  %411 = vadd.xlane.f32.xlu2 %v381_v28  ;;  %v344_v32 = vpop.f32.mrf.mxu3 }
  0xdf   :  { %v345_v33 = vadd.f32 %v344_v32, %v296_v30  ;;  %397 = vadd.xlane.f32.xlu1 %v374_v31 }
  0xe1   :  { %v362_v34 = vmax.f32 %v345_v33, 0.0 }
  0xe3   :  { %v382_v35 = vmul.f32 %v859_v5, %v362_v34 }
  0xe5   :  { %413 = vadd.xlane.f32.xlu0 %v382_v35 }
  0xe7   :  { %409 = vadd.xlane.f32.xlu1 %v380_v16 }
 0x11a   :  { %v384_v36 = vpop.xlane.xlu0 %383 }
 0x11b   :  { %v417_v55 = vadd.f32 %v416_v47, %v384_v36 }
 0x11d   :  { %v451_v2 = vperm.slane %v417_v55, %v895_v48 }
 0x120   :  { %v400_v37 = vpop.xlane.xlu2 %399 }
 0x121   :  { %v425_v3 = vadd.f32 %v416_v47, %v400_v37 }
 0x122   :  { %v386_v38 = vpop.xlane.xlu0 %385 }
 0x123   :  { %v418_v51 = vadd.f32 %v416_v47, %v386_v38  ;;  %v465_v15 = vperm.slane %v425_v3, %v895_v48 }
 0x125   :  { %v453_v59 = vperm.slane %v418_v51, %v452_v50 }
 0x127   :  { %v455_v9 = vsel %vm454_vm0, %v453_v59, %v451_v2 }
 0x12a   :  { %v388_v39 = vpop.xlane.xlu1 %387  ;;  %v402_v41 = vpop.xlane.xlu0 %401 }
 0x12b   :  { %v419_v52 = vadd.f32 %v416_v47, %v388_v39  ;;  %v426_v62 = vadd.f32 %v416_v47, %v402_v41 }
 0x12d   :  { %v456_v60 = vperm.slane %v419_v52, %v895_v48  ;;  %v466_v11 = vperm.slane %v426_v62, %v452_v50 }
 0x12f   :  { %v467_v25 = vsel %vm454_vm0, %v466_v11, %v465_v15 }
 0x132   :  { %v404_v42 = vpop.xlane.xlu1 %403 }
 0x133   :  { %v427_v16 = vadd.f32 %v416_v47, %v404_v42 }
 0x135   :  { %v468_v27 = vperm.slane %v427_v16, %v895_v48 }
 0x138   :  { %v406_v40 = vpop.xlane.xlu2 %405 }
 0x139   :  { %v428_v10 = vadd.f32 %v416_v47, %v406_v40 }
 0x13a   :  { %v390_v45 = vpop.xlane.xlu1 %389 }
 0x13b   :  { %v420_v5 = vadd.f32 %v416_v47, %v390_v45  ;;  %v469_v22 = vperm.slane %v428_v10, %v452_v50 }
 0x13d   :  { %v457_v56 = vperm.slane %v420_v5, %v452_v50  ;;  %v470_v32 = vsel %vm454_vm0, %v469_v22, %v468_v27 }
 0x13f   :  { %v458_v4 = vsel %vm454_vm0, %v457_v56, %v456_v60 }
 0x140   :  { %v392_v43 = vpop.xlane.xlu2 %391  ;;  %v408_v0 = vpop.xlane.xlu0 %407  ;;  %v478_v12 = vsel %vm477_vm1, %v458_v4, %v455_v9 }
 0x141   :  { %v421_v54 = vadd.f32 %v416_v47, %v392_v43  ;;  %v429_v19 = vadd.f32 %v416_v47, %v408_v0 }
 0x143   :  { %v459_v63 = vperm.slane %v421_v54, %v895_v48  ;;  %v471_v30 = vperm.slane %v429_v19, %v895_v48 }
 0x148   :  { %v394_v46 = vpop.xlane.xlu2 %393 }
 0x149   :  { %v422_v49 = vadd.f32 %v416_v47, %v394_v46 }
 0x14a   :  { %v396_v53 = vpop.xlane.xlu0 %395 }
 0x14b   :  { %v460_v57 = vperm.slane %v422_v49, %v452_v50  ;;  %v423_v58 = vadd.f32 %v416_v47, %v396_v53 }
 0x14d   :  { %v461_v6 = vsel %vm454_vm0, %v460_v57, %v459_v63  ;;  %v462_v7 = vperm.slane %v423_v58, %v895_v48 }
 0x14e   :  { %v480_v17 = vsel %vm479_vm2, %v461_v6, %v478_v12 }
 0x150   :  { %v412_v14 = vpop.xlane.xlu2 %411 }
 0x151   :  { %v431_v23 = vadd.f32 %v416_v47, %v412_v14 }
 0x152   :  { %v398_v61 = vpop.xlane.xlu1 %397 }
 0x153   :  { %v424_v1 = vadd.f32 %v416_v47, %v398_v61  ;;  %v474_v33 = vperm.slane %v431_v23, %v895_v48 }
 0x155   :  { %v463_v8 = vperm.slane %v424_v1, %v452_v50 }
 0x157   :  { %v464_v13 = vsel %vm454_vm0, %v463_v8, %v462_v7 }
 0x158   :  { %v414_v18 = vpop.xlane.xlu0 %413  ;;  %v482_v20 = vsel %vm481_vm3, %v464_v13, %v480_v17 }
 0x159   :  { %v432_v21 = vadd.f32 %v416_v47, %v414_v18  ;;  %v484_v28 = vsel %vm483_vm4, %v467_v25, %v482_v20 }
 0x15a   :  { %v410_v24 = vpop.xlane.xlu1 %409  ;;  %v486_v35 = vsel %vm485_vm5, %v470_v32, %v484_v28 }
 0x15b   :  { %v430_v26 = vadd.f32 %v416_v47, %v410_v24  ;;  %v475_v29 = vperm.slane %v432_v21, %v452_v50 }
 0x15d   :  { %v472_v31 = vperm.slane %v430_v26, %v452_v50  ;;  %v476_v36 = vsel %vm454_vm0, %v475_v29, %v474_v33 }
 0x15f   :  { %v473_v34 = vsel %vm454_vm0, %v472_v31, %v471_v30 }
 0x160   :  { %v488_v37 = vsel %vm487_vm6, %v473_v34, %v486_v35 }
 0x161   :  { %v490_v38 = vsel %vm489_vm7, %v476_v36, %v488_v37 }
 0x162   :  { %493 = vst.msk [vmem:[%s922_s5] sm:$0xff] %vm492_vm8, %v490_v38 }

// kernel: model_forward.16
= control target key start
LH: loop header
LB: loop body
LE: loop exit
PB: predicated region body
PF: predicated region fallthrough
CT: control target
= control target key end

     0   :  { %s1004_s0 = inlined_call_operand.vmem [shape: bf16[128,128], index: 0, kind: input, shape index: {}]   ;;  %s1005_s1 = inlined_call_operand.vmem [shape: bf16[128,256], index: 1, kind: input, shape index: {}]   ;;  %s1006_s2 = inlined_call_operand.vmem [shape: bf16[128,256], index: 2, kind: input, shape index: {}]   ;;  %s1007_s3 = inlined_call_operand.vmem [shape: f32[1,128], index: 3, kind: input, shape index: {}]   ;;  %s1008_s4 = inlined_call_operand.vmem [shape: bf16[128,128], index: 4, kind: output, shape index: {}]  }
   0x1   :  { %v57_v0 = vld [vmem:[%s1005_s1 + $0x70] sm:$0xf]  ;;  %v59_v1 = vld [vmem:[%s1005_s1 + $0x78] sm:$0xf]  ;;  %v53_v2 = vld [vmem:[%s1005_s1 + $0x60] sm:$0xf] }
   0x2   :  { %58 = vst [vmem:[#allocation3 + $0x38] sm:$0xf] %v57_v0  ;;  %v55_v3 = vld [vmem:[%s1005_s1 + $0x68] sm:$0xf]  ;;  %v49_v4 = vld [vmem:[%s1005_s1 + $0x50] sm:$0xf] }
   0x3   :  { %60 = vst [vmem:[#allocation3 + $0x3c] sm:$0xf] %v59_v1  ;;  %v51_v5 = vld [vmem:[%s1005_s1 + $0x58] sm:$0xf]  ;;  %v45_v6 = vld [vmem:[%s1005_s1 + $0x40] sm:$0xf] }
   0x4   :  { %54 = vst [vmem:[#allocation3 + $0x30] sm:$0xf] %v53_v2  ;;  %v47_v7 = vld [vmem:[%s1005_s1 + $0x48] sm:$0xf]  ;;  %v41_v8 = vld [vmem:[%s1005_s1 + $0x30] sm:$0xf] }
   0x5   :  { %56 = vst [vmem:[#allocation3 + $0x34] sm:$0xf] %v55_v3  ;;  %v43_v9 = vld [vmem:[%s1005_s1 + $0x38] sm:$0xf]  ;;  %v37_v10 = vld [vmem:[%s1005_s1 + $0x20] sm:$0xf] }
   0x6   :  { %50 = vst [vmem:[#allocation3 + $0x28] sm:$0xf] %v49_v4  ;;  %v39_v12 = vld [vmem:[%s1005_s1 + $0x28] sm:$0xf]  ;;  %v33_v13 = vld [vmem:[%s1005_s1 + $0x10] sm:$0xf] }
   0x7   :  { %52 = vst [vmem:[#allocation3 + $0x2c] sm:$0xf] %v51_v5  ;;  %v35_v15 = vld [vmem:[%s1005_s1 + $0x18] sm:$0xf]  ;;  %v29_v16 = vld [vmem:[%s1005_s1] sm:$0xf] }
   0x8   :  { %46 = vst [vmem:[#allocation3 + $0x20] sm:$0xf] %v45_v6  ;;  %v31_v17 = vld [vmem:[%s1005_s1 + $0x8] sm:$0xf]  ;;  %v607_v22 = vld [vmem:[%s1006_s2 + $0x4] sm:$0xf] }
   0x9   :  { %48 = vst [vmem:[#allocation3 + $0x24] sm:$0xf] %v47_v7  ;;  %v608_v23 = vld [vmem:[%s1006_s2 + $0xc] sm:$0xf]  ;;  %v695_v26 = vld [vmem:[%s1004_s0] sm:$0xff]  ;;  %v697_v27 = vld [vmem:[%s1004_s0 + $0x10] sm:$0xff] }
   0xa   :  { %v694_v11 = vld [vmem:[#allocation3 + $0x38] sm:$0xff]  ;;  %42 = vst [vmem:[#allocation3 + $0x18] sm:$0xf] %v41_v8  ;;  %v699_v28 = vld [vmem:[%s1004_s0 + $0x20] sm:$0xff]  ;;  %v701_v29 = vld [vmem:[%s1004_s0 + $0x30] sm:$0xff] }
   0xb   :  { %44 = vst [vmem:[#allocation3 + $0x1c] sm:$0xf] %v43_v9  ;;  %393 = vmatpush.bf16.msra.mxu0 %v694_v11  ;;  %789 = vmatpush.bf16.msra.mxu1 %v694_v11  ;;  %v696_v30 = vld [vmem:[%s1004_s0 + $0x8] sm:$0xff]  ;;  %v698_v31 = vld [vmem:[%s1004_s0 + $0x18] sm:$0xff]  ;;  %v611_v34 = vld [vmem:[%s1006_s2 + $0x24] sm:$0xf] }
   0xc   :  { %v693_v14 = vld [vmem:[#allocation3 + $0x30] sm:$0xff]  ;;  %38 = vst [vmem:[#allocation3 + $0x10] sm:$0xf] %v37_v10  ;;  %790 = vmatpush.bf16.msra.mxu2 %v694_v11  ;;  %791 = vmatpush.bf16.msra.mxu3 %v694_v11  ;;  %v700_v32 = vld [vmem:[%s1004_s0 + $0x28] sm:$0xff]  ;;  %v702_v33 = vld [vmem:[%s1004_s0 + $0x38] sm:$0xff] }
   0xd   :  { %40 = vst [vmem:[#allocation3 + $0x14] sm:$0xf] %v39_v12  ;;  %v612_v35 = vld [vmem:[%s1006_s2 + $0x2c] sm:$0xf]  ;;  %v615_v36 = vld [vmem:[%s1006_s2 + $0x44] sm:$0xf] }
   0xe   :  { %34 = vst [vmem:[#allocation3 + $0x8] sm:$0xf] %v33_v13  ;;  %v692_v18 = vld [vmem:[#allocation3 + $0x28] sm:$0xff]  ;;  %v619_v38 = vld [vmem:[%s1006_s2 + $0x64] sm:$0xf] }
   0xf   :  { %36 = vst [vmem:[#allocation3 + $0xc] sm:$0xf] %v35_v15  ;;  %394 = vmatpush.bf16.msra.mxu0 %v693_v14  ;;  %792 = vmatpush.bf16.msra.mxu1 %v693_v14  ;;  %v616_v37 = vld [vmem:[%s1006_s2 + $0x4c] sm:$0xf]  ;;  %v609_v40 = vld [vmem:[%s1006_s2 + $0x14] sm:$0xf] }
  0x10   :  { %30 = vst [vmem:[#allocation3] sm:$0xf] %v29_v16  ;;  %793 = vmatpush.bf16.msra.mxu2 %v693_v14  ;;  %794 = vmatpush.bf16.msra.mxu3 %v693_v14  ;;  %v691_v19 = vld [vmem:[#allocation3 + $0x20] sm:$0xff]  ;;  %v620_v39 = vld [vmem:[%s1006_s2 + $0x6c] sm:$0xf] }
  0x11   :  { %32 = vst [vmem:[#allocation3 + $0x4] sm:$0xf] %v31_v17  ;;  %v610_v41 = vld [vmem:[%s1006_s2 + $0x1c] sm:$0xf]  ;;  %v613_v42 = vld [vmem:[%s1006_s2 + $0x34] sm:$0xf] }
  0x12   :  { %v690_v20 = vld [vmem:[#allocation3 + $0x18] sm:$0xff]  ;;  %134 = vst [vmem:[#allocation4] sm:$0xf] %v607_v22  ;;  %v617_v44 = vld [vmem:[%s1006_s2 + $0x54] sm:$0xf] }
  0x13   :  { %395 = vmatpush.bf16.msra.mxu0 %v692_v18  ;;  %795 = vmatpush.bf16.msra.mxu1 %v692_v18  ;;  %136 = vst [vmem:[#allocation4 + $0x4] sm:$0xf] %v608_v23  ;;  %v614_v43 = vld [vmem:[%s1006_s2 + $0x3c] sm:$0xf]  ;;  %v621_v46 = vld [vmem:[%s1006_s2 + $0x74] sm:$0xf] }
  0x14   :  { %796 = vmatpush.bf16.msra.mxu2 %v692_v18  ;;  %797 = vmatpush.bf16.msra.mxu3 %v692_v18  ;;  %v689_v21 = vld [vmem:[#allocation3 + $0x10] sm:$0xff]  ;;  %142 = vst [vmem:[#allocation4 + $0x10] sm:$0xf] %v611_v34  ;;  %v618_v45 = vld [vmem:[%s1006_s2 + $0x5c] sm:$0xf] }
  0x15   :  { %144 = vst [vmem:[#allocation4 + $0x14] sm:$0xf] %v612_v35  ;;  %v622_v47 = vld [vmem:[%s1006_s2 + $0x7c] sm:$0xf]  ;;  %v962_v57 = vld [vmem:[%s1007_s3] ss:$0 sm:$0xff] }
  0x16   :  { %v688_v24 = vld [vmem:[#allocation3 + $0x8] sm:$0xff]  ;;  %150 = vst [vmem:[#allocation4 + $0x20] sm:$0xf] %v615_v36 }
  0x17   :  { %396 = vmatpush.bf16.msra.mxu0 %v691_v19  ;;  %798 = vmatpush.bf16.msra.mxu1 %v691_v19  ;;  %152 = vst [vmem:[#allocation4 + $0x24] sm:$0xf] %v616_v37 }
  0x18   :  { %799 = vmatpush.bf16.msra.mxu2 %v691_v19  ;;  %800 = vmatpush.bf16.msra.mxu3 %v691_v19  ;;  %v687_v25 = vld [vmem:[#allocation3] sm:$0xff]  ;;  %158 = vst [vmem:[#allocation4 + $0x30] sm:$0xf] %v619_v38 }
  0x19   :  { %160 = vst [vmem:[#allocation4 + $0x34] sm:$0xf] %v620_v39 }
  0x1a   :  { %138 = vst [vmem:[#allocation4 + $0x8] sm:$0xf] %v609_v40  ;;  %v704_v49 = vld [vmem:[#allocation4] sm:$0xff]  }
  0x1b   :  { %397 = vmatpush.bf16.msra.mxu0 %v690_v20  ;;  %801 = vmatpush.bf16.msra.mxu1 %v690_v20  ;;  %140 = vst [vmem:[#allocation4 + $0xc] sm:$0xf] %v610_v41  ;;  %v705_v52 = vunpack.c.l.bf16 %v704_v49  ;;  %v706_v54 = vunpack.c.h.bf16 %v704_v49 }
  0x1c   :  { %802 = vmatpush.bf16.msra.mxu2 %v690_v20  ;;  %803 = vmatpush.bf16.msra.mxu3 %v690_v20  ;;  %146 = vst [vmem:[#allocation4 + $0x18] sm:$0xf] %v613_v42  ;;  %v776_v51 = vld [vmem:[#allocation4 + $0x10] sm:$0xff]  }
  0x1d   :  { %148 = vst [vmem:[#allocation4 + $0x1c] sm:$0xf] %v614_v43  ;;  %v713_v53 = vunpack.c.l.bf16 %v776_v51  ;;  %v714_v55 = vunpack.c.h.bf16 %v776_v51 }
  0x1e   :  { %154 = vst [vmem:[#allocation4 + $0x28] sm:$0xf] %v617_v44  ;;  %v778_v60 = vld [vmem:[#allocation4 + $0x20] sm:$0xff]  }
  0x1f   :  { %398 = vmatpush.bf16.msra.mxu0 %v689_v21  ;;  %804 = vmatpush.bf16.msra.mxu1 %v689_v21  ;;  %156 = vst [vmem:[#allocation4 + $0x2c] sm:$0xf] %v618_v45  ;;  %v721_v3 = vunpack.c.l.bf16 %v778_v60  ;;  %v722_v9 = vunpack.c.h.bf16 %v778_v60 }
  0x20   :  { %805 = vmatpush.bf16.msra.mxu2 %v689_v21  ;;  %806 = vmatpush.bf16.msra.mxu3 %v689_v21  ;;  %162 = vst [vmem:[#allocation4 + $0x38] sm:$0xf] %v621_v46  ;;  %v780_v62 = vld [vmem:[#allocation4 + $0x30] sm:$0xff]  }
  0x21   :  { %164 = vst [vmem:[#allocation4 + $0x3c] sm:$0xf] %v622_v47  ;;  %v729_v4 = vunpack.c.l.bf16 %v780_v62  ;;  %v730_v10 = vunpack.c.h.bf16 %v780_v62 }
  0x22   :  { %v775_v20 = vld [vmem:[#allocation4 + $0x8] sm:$0xff]  }
  0x23   :  { %399 = vmatpush.bf16.msra.mxu0 %v688_v24  ;;  %807 = vmatpush.bf16.msra.mxu1 %v688_v24 }
  0x24   :  { %808 = vmatpush.bf16.msra.mxu2 %v688_v24  ;;  %809 = vmatpush.bf16.msra.mxu3 %v688_v24  ;;  %v777_v22 = vld [vmem:[#allocation4 + $0x18] sm:$0xff]  }
  0x26   :  { %v779_v36 = vld [vmem:[#allocation4 + $0x28] sm:$0xff]  }
  0x27   :  { %400 = vmatpush.bf16.msra.mxu0 %v687_v25  ;;  %810 = vmatpush.bf16.msra.mxu1 %v687_v25  ;;  %v725_v43 = vunpack.c.l.bf16 %v779_v36  ;;  %v726_v49 = vunpack.c.h.bf16 %v779_v36 }
  0x28   :  { %811 = vmatpush.bf16.msra.mxu2 %v687_v25  ;;  %812 = vmatpush.bf16.msra.mxu3 %v687_v25  ;;  %v781_v38 = vld [vmem:[#allocation4 + $0x38] sm:$0xff]  }
  0x29   :  { %v733_v44 = vunpack.c.l.bf16 %v781_v38 }
  0x2a   :  { %401 = vmatmul.bf16.vlgmr.msra.gmra.mxu0 %v695_v26  ;;  %411 = vmatmul.bf16.vlgmr.msra.gmra.mxu1 %v697_v27  ;;  %v709_v27 = vunpack.c.l.bf16 %v775_v20 }
  0x2b   :  { %421 = vmatmul.bf16.vlgmr.msra.gmra.mxu2 %v699_v28  ;;  %431 = vmatmul.bf16.vlgmr.msra.gmra.mxu3 %v701_v29  ;;  %v717_v28 = vunpack.c.l.bf16 %v777_v22 }
  0x3a   :  { %406 = vmatmul.bf16.gmra.mxu0 %v696_v30  ;;  %416 = vmatmul.bf16.gmra.mxu1 %v698_v31  ;;  %v710_v31 = vunpack.c.h.bf16 %v775_v20 }
  0x3b   :  { %426 = vmatmul.bf16.gmra.mxu2 %v700_v32  ;;  %436 = vmatmul.bf16.gmra.mxu3 %v702_v33  ;;  %v718_v32 = vunpack.c.h.bf16 %v777_v22 }
  0xa7   :  { %v402_v48 = vpop.f32.mrf.mxu0  ;;  %v412_v50 = vpop.f32.mrf.mxu1 }
  0xa8   :  { %v525_v56 = vadd.f32 %v705_v52, %v402_v48  ;;  %v529_v58 = vadd.f32 %v713_v53, %v412_v50  ;;  %v734_v50 = vunpack.c.h.bf16 %v781_v38 }
  0xaa   :  { %v545_v5 = vadd.f32 %v962_v57, %v525_v56  ;;  %v549_v6 = vadd.f32 %v962_v57, %v529_v58 }
  0xae   :  { %v422_v59 = vpop.f32.mrf.mxu2  ;;  %v432_v61 = vpop.f32.mrf.mxu3 }
  0xaf   :  { %v404_v63 = vpop.f32.mrf.mxu0  ;;  %v414_v0 = vpop.f32.mrf.mxu1  ;;  %v533_v13 = vadd.f32 %v721_v3, %v422_v59  ;;  %v537_v14 = vadd.f32 %v729_v4, %v432_v61 }
  0xb0   :  { %v526_v1 = vadd.f32 %v706_v54, %v404_v63  ;;  %v530_v2 = vadd.f32 %v714_v55, %v414_v0 }
  0xb1   :  { %v553_v23 = vadd.f32 %v962_v57, %v533_v13  ;;  %v557_v24 = vadd.f32 %v962_v57, %v537_v14 }
  0xb2   :  { %v546_v7 = vadd.f32 %v962_v57, %v526_v1  ;;  %v550_v8 = vadd.f32 %v962_v57, %v530_v2 }
  0xb4   :  { %v738_v11 = vpack.c.bf16 %v546_v7, %v545_v5  ;;  %v748_v12 = vpack.c.bf16 %v550_v8, %v549_v6 }
  0xb6   :  { %739 = vst [vmem:[%s1008_s4] sm:$0xff] %v738_v11   ;;  %v424_v15 = vpop.f32.mrf.mxu2  ;;  %v434_v16 = vpop.f32.mrf.mxu3 }
  0xb7   :  { %783 = vst [vmem:[%s1008_s4 + $0x10] sm:$0xff] %v748_v12   ;;  %v534_v17 = vadd.f32 %v722_v9, %v424_v15  ;;  %v538_v18 = vadd.f32 %v730_v10, %v434_v16  ;;  %v407_v19 = vpop.f32.mrf.mxu0  ;;  %v417_v21 = vpop.f32.mrf.mxu1 }
  0xb8   :  { %v527_v33 = vadd.f32 %v709_v27, %v407_v19  ;;  %v531_v34 = vadd.f32 %v717_v28, %v417_v21 }
  0xb9   :  { %v554_v25 = vadd.f32 %v962_v57, %v534_v17  ;;  %v558_v26 = vadd.f32 %v962_v57, %v538_v18 }
  0xba   :  { %v547_v45 = vadd.f32 %v962_v57, %v527_v33  ;;  %v551_v46 = vadd.f32 %v962_v57, %v531_v34 }
  0xbb   :  { %v758_v29 = vpack.c.bf16 %v554_v25, %v553_v23  ;;  %v768_v30 = vpack.c.bf16 %v558_v26, %v557_v24 }
  0xbd   :  { %785 = vst [vmem:[%s1008_s4 + $0x20] sm:$0xff] %v758_v29  }
  0xbe   :  { %787 = vst [vmem:[%s1008_s4 + $0x30] sm:$0xff] %v768_v30   ;;  %v427_v35 = vpop.f32.mrf.mxu2  ;;  %v437_v37 = vpop.f32.mrf.mxu3 }
  0xbf   :  { %v409_v39 = vpop.f32.mrf.mxu0  ;;  %v419_v40 = vpop.f32.mrf.mxu1  ;;  %v535_v53 = vadd.f32 %v725_v43, %v427_v35  ;;  %v539_v54 = vadd.f32 %v733_v44, %v437_v37 }
  0xc0   :  { %v528_v41 = vadd.f32 %v710_v31, %v409_v39  ;;  %v532_v42 = vadd.f32 %v718_v32, %v419_v40 }
  0xc1   :  { %v555_v60 = vadd.f32 %v962_v57, %v535_v53  ;;  %v559_v61 = vadd.f32 %v962_v57, %v539_v54 }
  0xc2   :  { %v548_v47 = vadd.f32 %v962_v57, %v528_v41  ;;  %v552_v48 = vadd.f32 %v962_v57, %v532_v42 }
  0xc4   :  { %v743_v51 = vpack.c.bf16 %v548_v47, %v547_v45  ;;  %v753_v52 = vpack.c.bf16 %v552_v48, %v551_v46 }
  0xc6   :  { %782 = vst [vmem:[%s1008_s4 + $0x8] sm:$0xff] %v743_v51   ;;  %v429_v55 = vpop.f32.mrf.mxu2  ;;  %v439_v56 = vpop.f32.mrf.mxu3 }
  0xc7   :  { %784 = vst [vmem:[%s1008_s4 + $0x18] sm:$0xff] %v753_v52   ;;  %v536_v58 = vadd.f32 %v726_v49, %v429_v55  ;;  %v540_v59 = vadd.f32 %v734_v50, %v439_v56 }
  0xc9   :  { %v556_v62 = vadd.f32 %v962_v57, %v536_v58  ;;  %v560_v63 = vadd.f32 %v962_v57, %v540_v59 }
  0xcb   :  { %v763_v0 = vpack.c.bf16 %v556_v62, %v555_v60  ;;  %v773_v1 = vpack.c.bf16 %v560_v63, %v559_v61 }
  0xcd   :  { %786 = vst [vmem:[%s1008_s4 + $0x28] sm:$0xff] %v763_v0  }
  0xce   :  { %788 = vst [vmem:[%s1008_s4 + $0x38] sm:$0xff] %v773_v1  }

</bundles_post_ra>
